<compile_context>
chip_gen: v5e
topology: v5e:2x2
jax: 0.10.0
libtpu: 0.0.40
codegen_flags: <defaults>
</compile_context>

<pallas_src>
import jax
import jax.numpy as jnp
from jax.experimental import pallas as pl
from jax.experimental.pallas import tpu as pltpu

CHUNK = 256            # lanes per inner chunk (keeps h at a 32-vreg f32 tile)
BLOCK = 4 * CHUNK      # default lanes per grid step (amortizes ~0.35us/step)


def _make_qnet_kernel(num_chunks):
    """Build the fused MLP kernel for a (4, num_chunks * CHUNK) input block."""

    def qnet_kernel(alpha_ref,               # scalar prefetch: (3,) PReLU alphas (SMEM)
                    xT_ref,                   # (4, block)   f32   states, batch on lanes
                    w1_ref, b1_ref,           # (128, 4)  f32, (128, 1) f32
                    w2_ref, b2_ref,           # (128,128) bf16, (128, 1) f32
                    w3_ref, b3_ref,           # (128,128) bf16, (128, 1) f32
                    w4_ref, b4_ref,           # (128, 1)  f32, (1, 1)    f32
                    o_ref):                   # (1, block)   f32   Q-values (lane-dense)
        # Hoist SMEM scalar reads and all weight loads out of the chunk loop
        # (JAX does not CSE broadcasts/loads inside unrolled loops).
        a1 = alpha_ref[0]
        a2 = alpha_ref[1]
        a3 = alpha_ref[2]

        w1 = w1_ref[...]                                   # (128, 4)
        w1_cols = [w1[:, k:k + 1] for k in range(4)]       # hoisted (128,1) slices
        b1 = b1_ref[...]
        w2 = w2_ref[...]
        b2 = b2_ref[...]
        w3 = w3_ref[...]
        b3 = b3_ref[...]
        w4 = w4_ref[...]
        b4 = b4_ref[...]

        def prelu(h, a):
            return jnp.where(h > 0, h, a * h)

        # Static unroll over lane chunks: bounds live vreg pressure to one
        # (128, CHUNK) f32 activation while amortizing per-grid-step overhead.
        for c in range(num_chunks):
            sl = pl.ds(c * CHUNK, CHUNK)                   # static, CHUNK-aligned
            xT = xT_ref[:, sl]                             # (4, CHUNK) f32

            # --- Layer 1 (in=4): 4 broadcast FMAs on the VPU (skip the
            # degenerate K=4 MXU matmul).
            h = b1 + w1_cols[0] * xT[0:1, :]
            for k in range(1, 4):
                h = h + w1_cols[k] * xT[k:k + 1, :]
            h = prelu(h, a1)                               # (128, CHUNK) f32

            # --- Layers 2/3 (128x128): bf16 MXU inputs, f32 accumulation.
            h = jnp.dot(w2, h.astype(jnp.bfloat16),
                        preferred_element_type=jnp.float32) + b2
            h = prelu(h, a2)
            h = jnp.dot(w3, h.astype(jnp.bfloat16),
                        preferred_element_type=jnp.float32) + b3
            h = prelu(h, a3)

            # --- Final layer (out=1): mul + sublane reduce -> lane-dense (1, CHUNK).
            q = jnp.sum(w4 * h, axis=0, keepdims=True) + b4
            o_ref[:, sl] = q.astype(o_ref.dtype)

    return qnet_kernel


def qnetwork_forward_T(xT, params, block=BLOCK):
    """xT: (4, N) float32 states (batch already on lanes) -> (N, 1) Q-values.

    Preferred entry point: storing states as (4, N) upstream removes the
    wrapper-side HBM transpose entirely (perf review item)."""
    (w1, b1, w2, b2, w3, b3, w4, b4, alphas) = params
    assert xT.shape[0] == 4 and block % CHUNK == 0
    n = xT.shape[1]

    # Shrink the block for tiny batches (don't compute pure padding); for real
    # batches keep n_pad // block >= 2 (ideally even) so ("parallel",) can use
    # both v7x TensorCores.
    block = max(CHUNK, min(block, pl.cdiv(n, CHUNK) * CHUNK))
    num_chunks = block // CHUNK
    n_pad = pl.cdiv(n, block) * block

    # Pad along the lane axis AFTER the transpose (single fused copy / no
    # padded (N,4) intermediate).  (4, N) traffic is tiny either way.
    xTp = jnp.pad(xT.astype(jnp.float32), ((0, 0), (0, n_pad - n)))   # (4, n_pad)

    # bf16 MXU inputs for the 128x128 layers (cache these casts in a real
    # training loop; they are redone per call here).
    w2b = w2.astype(jnp.bfloat16)
    w3b = w3.astype(jnp.bfloat16)

    const = lambda i, a: (0, 0)     # weights / biases: whole-array blocks
    col = lambda i, a: (0, i)       # states / Q-values: batch-tiled along lanes

    out = pl.pallas_call(
        _make_qnet_kernel(num_chunks),
        out_shape=jax.ShapeDtypeStruct((1, n_pad), jnp.float32),
        grid_spec=pltpu.PrefetchScalarGridSpec(
            num_scalar_prefetch=1,
            grid=(n_pad // block,),
            in_specs=[
                pl.BlockSpec((4, block), col),
                pl.BlockSpec((128, 4), const), pl.BlockSpec((128, 1), const),
                pl.BlockSpec((128, 128), const), pl.BlockSpec((128, 1), const),
                pl.BlockSpec((128, 128), const), pl.BlockSpec((128, 1), const),
                pl.BlockSpec((128, 1), const), pl.BlockSpec((1, 1), const),
            ],
            out_specs=pl.BlockSpec((1, block), col),
        ),
        compiler_params=pltpu.CompilerParams(
            dimension_semantics=("parallel",)),
    )(alphas, xTp, w1, b1, w2b, b2, w3b, b3, w4, b4)

    return out[0, :n].reshape(n, 1)


def qnetwork_forward(x, params, block=BLOCK):
    """x: (N, 4) float32 -> (N, 1) float32 Q-values (transposes then pads)."""
    return qnetwork_forward_T(x.astype(jnp.float32).T, params, block)


def init_params(key):
    """Mirror the PyTorch module's init: xavier-uniform weights (torch
    (out_features, in_features) layout, except w4 stored as a (128,1) column),
    zero biases, PReLU alpha = 0.25."""
    def xavier(k, fan_out, fan_in, shape):
        limit = jnp.sqrt(6.0 / (fan_in + fan_out))
        return jax.random.uniform(k, shape, jnp.float32, -limit, limit)

    k1, k2, k3, k4 = jax.random.split(key, 4)
    w1 = xavier(k1, 128, 4, (128, 4));     b1 = jnp.zeros((128, 1), jnp.float32)
    w2 = xavier(k2, 128, 128, (128, 128)); b2 = jnp.zeros((128, 1), jnp.float32)
    w3 = xavier(k3, 128, 128, (128, 128)); b3 = jnp.zeros((128, 1), jnp.float32)
    w4 = xavier(k4, 1, 128, (128, 1));     b4 = jnp.zeros((1, 1), jnp.float32)
    alphas = jnp.full((3,), 0.25, jnp.float32)  # torch.nn.PReLU() default
    return (w1, b1, w2, b2, w3, b3, w4, b4, alphas)


def reference_forward(x, params):
    """Pure-JAX f32 reference (highest precision matmuls)."""
    (w1, b1, w2, b2, w3, b3, w4, b4, a) = params
    P = jax.lax.Precision.HIGHEST
    prelu = lambda h, al: jnp.where(h > 0, h, al * h)
    h = prelu(jnp.dot(x, w1.T, precision=P) + b1.T, a[0])
    h = prelu(jnp.dot(h, w2.T, precision=P) + b2.T, a[1])
    h = prelu(jnp.dot(h, w3.T, precision=P) + b3.T, a[2])
    return jnp.dot(h, w4, precision=P) + b4


if __name__ == "__main__":
    key = jax.random.PRNGKey(0)
    kx, kp = jax.random.split(key)

    # Module-faithful init, then perturb biases/alphas so the correctness check
    # actually exercises the bias adds and per-layer PReLU parameters.
    (w1, b1, w2, b2, w3, b3, w4, b4, alphas) = init_params(kp)
    kb1, kb2, kb3, kb4 = jax.random.split(jax.random.fold_in(kp, 1), 4)
    b1 = 0.1 * jax.random.normal(kb1, b1.shape, jnp.float32)
    b2 = 0.1 * jax.random.normal(kb2, b2.shape, jnp.float32)
    b3 = 0.1 * jax.random.normal(kb3, b3.shape, jnp.float32)
    b4 = 0.1 * jax.random.normal(kb4, b4.shape, jnp.float32)
    alphas = jnp.array([0.1, 0.25, 0.4], jnp.float32)
    params = (w1, b1, w2, b2, w3, b3, w4, b4, alphas)

    # n=16   -> tiny batch, block shrinks to one 256-lane chunk, 1 grid step.
    # n=300  -> non-divisible batch, 2 chunks in one grid step.
    # n=2500 -> multi-step grid (3 steps x 4 chunks), exercises the pipeline.
    for n in (16, 300, 2500):
        x = jax.random.normal(jax.random.fold_in(kx, n), (n, 4), jnp.float32)
        out = jax.block_until_ready(qnetwork_forward(x, params))
        ref = reference_forward(x, params)
        assert out.shape == (n, 1)
        # Tolerance reflects bf16 MXU inputs (f32 accumulation) in layers 2/3.
        assert jnp.allclose(out, ref, atol=3e-2, rtol=3e-2), (
            n, float(jnp.max(jnp.abs(out - ref))))
    print("KERNEL_OK")
</pallas_src>

<mosaic_0001>
module attributes {stable_mosaic.version = 11 : i64} {
  func.func @qnet_kernel(%arg0: i32, %arg1: memref<3xf32, #tpu.memory_space<smem>>, %arg2: memref<4x256xf32, #tpu.memory_space<vmem>>, %arg3: memref<128x4xf32, #tpu.memory_space<vmem>>, %arg4: memref<128x1xf32, #tpu.memory_space<vmem>>, %arg5: memref<128x128xbf16, #tpu.memory_space<vmem>>, %arg6: memref<128x1xf32, #tpu.memory_space<vmem>>, %arg7: memref<128x128xbf16, #tpu.memory_space<vmem>>, %arg8: memref<128x1xf32, #tpu.memory_space<vmem>>, %arg9: memref<128x1xf32, #tpu.memory_space<vmem>>, %arg10: memref<1x1xf32, #tpu.memory_space<vmem>>, %arg11: memref<1x256xf32, #tpu.memory_space<vmem>>) attributes {dimension_semantics = [#tpu.dimension_semantics<parallel>], iteration_bounds = array<i64: 1>, scalar_prefetch = 1 : i64, scratch_operands = 0 : i64, tpu.core_type = #tpu.core_type<tc>, window_params = [{transform_indices = @transform_0, window_bounds = array<i64: 4, 256>}, {pipeline_mode = #tpu.pipeline_mode<synchronous>, transform_indices = @transform_1, window_bounds = array<i64: 128, 4>}, {pipeline_mode = #tpu.pipeline_mode<synchronous>, transform_indices = @transform_2, window_bounds = array<i64: 128, 1>}, {pipeline_mode = #tpu.pipeline_mode<synchronous>, transform_indices = @transform_3, window_bounds = array<i64: 128, 128>}, {pipeline_mode = #tpu.pipeline_mode<synchronous>, transform_indices = @transform_4, window_bounds = array<i64: 128, 1>}, {pipeline_mode = #tpu.pipeline_mode<synchronous>, transform_indices = @transform_5, window_bounds = array<i64: 128, 128>}, {pipeline_mode = #tpu.pipeline_mode<synchronous>, transform_indices = @transform_6, window_bounds = array<i64: 128, 1>}, {pipeline_mode = #tpu.pipeline_mode<synchronous>, transform_indices = @transform_7, window_bounds = array<i64: 128, 1>}, {pipeline_mode = #tpu.pipeline_mode<synchronous>, transform_indices = @transform_8, window_bounds = array<i64: 1, 1>}, {transform_indices = @transform_9, window_bounds = array<i64: 1, 256>}]} {
    %c0 = arith.constant 0 : index
    %0 = memref.load %arg1[%c0] : memref<3xf32, #tpu.memory_space<smem>>
    %c1 = arith.constant 1 : index
    %1 = memref.load %arg1[%c1] : memref<3xf32, #tpu.memory_space<smem>>
    %c2 = arith.constant 2 : index
    %2 = memref.load %arg1[%c2] : memref<3xf32, #tpu.memory_space<smem>>
    %c0_0 = arith.constant 0 : index
    %c0_1 = arith.constant 0 : index
    %3 = vector.load %arg3[%c0_0, %c0_1] : memref<128x4xf32, #tpu.memory_space<vmem>>, vector<128x4xf32>
    %4 = vector.extract_strided_slice %3 {offsets = [0, 0], sizes = [128, 1], strides = [1, 1]} : vector<128x4xf32> to vector<128x1xf32>
    %5 = vector.extract_strided_slice %3 {offsets = [0, 1], sizes = [128, 1], strides = [1, 1]} : vector<128x4xf32> to vector<128x1xf32>
    %6 = vector.extract_strided_slice %3 {offsets = [0, 2], sizes = [128, 1], strides = [1, 1]} : vector<128x4xf32> to vector<128x1xf32>
    %7 = vector.extract_strided_slice %3 {offsets = [0, 3], sizes = [128, 1], strides = [1, 1]} : vector<128x4xf32> to vector<128x1xf32>
    %c0_2 = arith.constant 0 : index
    %c0_3 = arith.constant 0 : index
    %8 = vector.load %arg4[%c0_2, %c0_3] : memref<128x1xf32, #tpu.memory_space<vmem>>, vector<128x1xf32>
    %c0_4 = arith.constant 0 : index
    %c0_5 = arith.constant 0 : index
    %9 = vector.load %arg5[%c0_4, %c0_5] : memref<128x128xbf16, #tpu.memory_space<vmem>>, vector<128x128xbf16>
    %c0_6 = arith.constant 0 : index
    %c0_7 = arith.constant 0 : index
    %10 = vector.load %arg6[%c0_6, %c0_7] : memref<128x1xf32, #tpu.memory_space<vmem>>, vector<128x1xf32>
    %c0_8 = arith.constant 0 : index
    %c0_9 = arith.constant 0 : index
    %11 = vector.load %arg7[%c0_8, %c0_9] : memref<128x128xbf16, #tpu.memory_space<vmem>>, vector<128x128xbf16>
    %c0_10 = arith.constant 0 : index
    %c0_11 = arith.constant 0 : index
    %12 = vector.load %arg8[%c0_10, %c0_11] : memref<128x1xf32, #tpu.memory_space<vmem>>, vector<128x1xf32>
    %c0_12 = arith.constant 0 : index
    %c0_13 = arith.constant 0 : index
    %13 = vector.load %arg9[%c0_12, %c0_13] : memref<128x1xf32, #tpu.memory_space<vmem>>, vector<128x1xf32>
    %c0_14 = arith.constant 0 : index
    %c0_15 = arith.constant 0 : index
    %14 = vector.load %arg10[%c0_14, %c0_15] : memref<1x1xf32, #tpu.memory_space<vmem>>, vector<1x1xf32>
    %c0_16 = arith.constant 0 : index
    %c0_17 = arith.constant 0 : index
    %15 = vector.load %arg2[%c0_16, %c0_17] : memref<4x256xf32, #tpu.memory_space<vmem>>, vector<4x256xf32>
    %16 = vector.extract_strided_slice %15 {offsets = [0, 0], sizes = [1, 256], strides = [1, 1]} : vector<4x256xf32> to vector<1x256xf32>
    %17 = vector.broadcast %4 : vector<128x1xf32> to vector<128x256xf32>
    %18 = vector.broadcast %16 : vector<1x256xf32> to vector<128x256xf32>
    %19 = arith.mulf %17, %18 : vector<128x256xf32>
    %20 = vector.broadcast %8 : vector<128x1xf32> to vector<128x256xf32>
    %21 = arith.addf %20, %19 : vector<128x256xf32>
    %22 = vector.extract_strided_slice %15 {offsets = [1, 0], sizes = [1, 256], strides = [1, 1]} : vector<4x256xf32> to vector<1x256xf32>
    %23 = vector.broadcast %5 : vector<128x1xf32> to vector<128x256xf32>
    %24 = vector.broadcast %22 : vector<1x256xf32> to vector<128x256xf32>
    %25 = arith.mulf %23, %24 : vector<128x256xf32>
    %26 = arith.addf %21, %25 : vector<128x256xf32>
    %27 = vector.extract_strided_slice %15 {offsets = [2, 0], sizes = [1, 256], strides = [1, 1]} : vector<4x256xf32> to vector<1x256xf32>
    %28 = vector.broadcast %6 : vector<128x1xf32> to vector<128x256xf32>
    %29 = vector.broadcast %27 : vector<1x256xf32> to vector<128x256xf32>
    %30 = arith.mulf %28, %29 : vector<128x256xf32>
    %31 = arith.addf %26, %30 : vector<128x256xf32>
    %32 = vector.extract_strided_slice %15 {offsets = [3, 0], sizes = [1, 256], strides = [1, 1]} : vector<4x256xf32> to vector<1x256xf32>
    %33 = vector.broadcast %7 : vector<128x1xf32> to vector<128x256xf32>
    %34 = vector.broadcast %32 : vector<1x256xf32> to vector<128x256xf32>
    %35 = arith.mulf %33, %34 : vector<128x256xf32>
    %36 = arith.addf %31, %35 : vector<128x256xf32>
    %cst = arith.constant 0.000000e+00 : f32
    %37 = vector.broadcast %cst : f32 to vector<128x256xf32>
    %38 = arith.cmpf ogt, %36, %37 : vector<128x256xf32>
    %39 = vector.broadcast %0 : f32 to vector<128x256xf32>
    %40 = arith.mulf %39, %36 : vector<128x256xf32>
    %41 = arith.select %38, %36, %40 : vector<128x256xi1>, vector<128x256xf32>
    %42 = arith.truncf %41 : vector<128x256xf32> to vector<128x256xbf16>
    %cst_18 = arith.constant dense<0.000000e+00> : vector<128x256xf32>
    %43 = tpu.matmul %9, %42, %cst_18 {dimension_numbers = #tpu.dot_dimension_numbers<[1], [0], [0], [1], [0, 0, 1, 1], [], []>} : vector<128x128xbf16>, vector<128x256xbf16>, vector<128x256xf32> -> vector<128x256xf32>
    %44 = vector.broadcast %10 : vector<128x1xf32> to vector<128x256xf32>
    %45 = arith.addf %43, %44 : vector<128x256xf32>
    %cst_19 = arith.constant 0.000000e+00 : f32
    %46 = vector.broadcast %cst_19 : f32 to vector<128x256xf32>
    %47 = arith.cmpf ogt, %45, %46 : vector<128x256xf32>
    %48 = vector.broadcast %1 : f32 to vector<128x256xf32>
    %49 = arith.mulf %48, %45 : vector<128x256xf32>
    %50 = arith.select %47, %45, %49 : vector<128x256xi1>, vector<128x256xf32>
    %51 = arith.truncf %50 : vector<128x256xf32> to vector<128x256xbf16>
    %cst_20 = arith.constant dense<0.000000e+00> : vector<128x256xf32>
    %52 = tpu.matmul %11, %51, %cst_20 {dimension_numbers = #tpu.dot_dimension_numbers<[1], [0], [0], [1], [0, 0, 1, 1], [], []>} : vector<128x128xbf16>, vector<128x256xbf16>, vector<128x256xf32> -> vector<128x256xf32>
    %53 = vector.broadcast %12 : vector<128x1xf32> to vector<128x256xf32>
    %54 = arith.addf %52, %53 : vector<128x256xf32>
    %cst_21 = arith.constant 0.000000e+00 : f32
    %55 = vector.broadcast %cst_21 : f32 to vector<128x256xf32>
    %56 = arith.cmpf ogt, %54, %55 : vector<128x256xf32>
    %57 = vector.broadcast %2 : f32 to vector<128x256xf32>
    %58 = arith.mulf %57, %54 : vector<128x256xf32>
    %59 = arith.select %56, %54, %58 : vector<128x256xi1>, vector<128x256xf32>
    %60 = vector.broadcast %13 : vector<128x1xf32> to vector<128x256xf32>
    %61 = arith.mulf %60, %59 : vector<128x256xf32>
    %cst_22 = arith.constant dense<0.000000e+00> : vector<256xf32>
    %62 = vector.multi_reduction <add>, %61, %cst_22 [0] : vector<128x256xf32> to vector<256xf32>
    %63 = vector.shape_cast %62 : vector<256xf32> to vector<1x256xf32>
    %64 = vector.broadcast %14 : vector<1x1xf32> to vector<1x256xf32>
    %65 = arith.addf %63, %64 : vector<1x256xf32>
    %c0_23 = arith.constant 0 : index
    %c0_24 = arith.constant 0 : index
    %66 = vector.load %arg11[%c0_23, %c0_24] : memref<1x256xf32, #tpu.memory_space<vmem>>, vector<1x256xf32>
    tpu.vector_store %arg11[%c0_23, %c0_24], %65 {strides = array<i32>} : memref<1x256xf32, #tpu.memory_space<vmem>>, vector<1x256xf32>,
    return
  }
  func.func @transform_0(%arg0: i32, %arg1: memref<3xf32, #tpu.memory_space<smem>>) -> (i32, i32) {
    %c0_i32 = arith.constant 0 : i32
    %c0_i32_0 = arith.constant 0 : i32
    return %c0_i32, %arg0 : i32, i32
  }
  func.func @transform_1(%arg0: i32, %arg1: memref<3xf32, #tpu.memory_space<smem>>) -> (i32, i32) {
    %c0_i32 = arith.constant 0 : i32
    %c0_i32_0 = arith.constant 0 : i32
    %c0_i32_1 = arith.constant 0 : i32
    return %c0_i32, %c0_i32_0 : i32, i32
  }
  func.func @transform_2(%arg0: i32, %arg1: memref<3xf32, #tpu.memory_space<smem>>) -> (i32, i32) {
    %c0_i32 = arith.constant 0 : i32
    %c0_i32_0 = arith.constant 0 : i32
    %c0_i32_1 = arith.constant 0 : i32
    return %c0_i32, %c0_i32_0 : i32, i32
  }
  func.func @transform_3(%arg0: i32, %arg1: memref<3xf32, #tpu.memory_space<smem>>) -> (i32, i32) {
    %c0_i32 = arith.constant 0 : i32
    %c0_i32_0 = arith.constant 0 : i32
    %c0_i32_1 = arith.constant 0 : i32
    return %c0_i32, %c0_i32_0 : i32, i32
  }
  func.func @transform_4(%arg0: i32, %arg1: memref<3xf32, #tpu.memory_space<smem>>) -> (i32, i32) {
    %c0_i32 = arith.constant 0 : i32
    %c0_i32_0 = arith.constant 0 : i32
    %c0_i32_1 = arith.constant 0 : i32
    return %c0_i32, %c0_i32_0 : i32, i32
  }
  func.func @transform_5(%arg0: i32, %arg1: memref<3xf32, #tpu.memory_space<smem>>) -> (i32, i32) {
    %c0_i32 = arith.constant 0 : i32
    %c0_i32_0 = arith.constant 0 : i32
    %c0_i32_1 = arith.constant 0 : i32
    return %c0_i32, %c0_i32_0 : i32, i32
  }
  func.func @transform_6(%arg0: i32, %arg1: memref<3xf32, #tpu.memory_space<smem>>) -> (i32, i32) {
    %c0_i32 = arith.constant 0 : i32
    %c0_i32_0 = arith.constant 0 : i32
    %c0_i32_1 = arith.constant 0 : i32
    return %c0_i32, %c0_i32_0 : i32, i32
  }
  func.func @transform_7(%arg0: i32, %arg1: memref<3xf32, #tpu.memory_space<smem>>) -> (i32, i32) {
    %c0_i32 = arith.constant 0 : i32
    %c0_i32_0 = arith.constant 0 : i32
    %c0_i32_1 = arith.constant 0 : i32
    return %c0_i32, %c0_i32_0 : i32, i32
  }
  func.func @transform_8(%arg0: i32, %arg1: memref<3xf32, #tpu.memory_space<smem>>) -> (i32, i32) {
    %c0_i32 = arith.constant 0 : i32
    %c0_i32_0 = arith.constant 0 : i32
    %c0_i32_1 = arith.constant 0 : i32
    return %c0_i32, %c0_i32_0 : i32, i32
  }
  func.func @transform_9(%arg0: i32, %arg1: memref<3xf32, #tpu.memory_space<smem>>) -> (i32, i32) {
    %c0_i32 = arith.constant 0 : i32
    %c0_i32_0 = arith.constant 0 : i32
    return %c0_i32, %arg0 : i32, i32
  }
}

</mosaic_0001>

<bundles_post_ra>
// kernel: tpu_custom_call.1
= control target key start
LH: loop header
LB: loop body
LE: loop exit
PB: predicated region body
PF: predicated region fallthrough
CT: control target
= control target key end

     0   :  { %s1940_s18 = smov [#allocation3]   ;;  %s3077_s0 = inlined_call_operand.vmem [shape: f32[3], index: 0, kind: input, shape index: {}]   ;;  %s3078_s1 = inlined_call_operand.vmem [shape: f32[4,256], index: 1, kind: input, shape index: {}]   ;;  %s3079_s2 = inlined_call_operand.vmem [shape: f32[128,4], index: 2, kind: input, shape index: {}]   ;;  %s3080_s3 = inlined_call_operand.vmem [shape: f32[128,1], index: 3, kind: input, shape index: {}]   ;;  %s3081_s4 = inlined_call_operand.vmem [shape: bf16[128,128], index: 4, kind: input, shape index: {}]   ;;  %s3082_s5 = inlined_call_operand.vmem [shape: f32[128,1], index: 5, kind: input, shape index: {}]   ;;  %s3083_s6 = inlined_call_operand.vmem [shape: bf16[128,128], index: 6, kind: input, shape index: {}]   ;;  %s3084_s7 = inlined_call_operand.vmem [shape: f32[128,1], index: 7, kind: input, shape index: {}]   ;;  %s3085_s8 = inlined_call_operand.vmem [shape: f32[128,1], index: 8, kind: input, shape index: {}]   ;;  %s3086_s10 = inlined_call_operand.hbm [shape: f32[1,256], index: 10, kind: output, shape index: {}]   ;;  %s3087_s9 = inlined_call_operand.<no memory space> [shape: f32[1,1], index: 9, kind: input, shape index: {}]  }
   0x1   :  { %s16_s15 = sshll.u32 %s3077_s0, 4  ;;  %v20_v0 = vstv %s3087_s9  ;;  %s17_s15 = int_to_ptr.vmem [resolvable:$true] %s16_s15 }
   0x2   :  { %21 = vst [vmem:[#allocation4] sm:$0x1] %v20_v0  ;;  %19 = dma.vmem_to_smem %s17_s15, 16, %s1940_s18, [#allocation2] }
   0x3   :  { %1936 = dma.done.wait [#allocation2], 16 }
   0x4   :  { %1937 = vsyncadd [#allocation2], 4294967280 }
   0x5   :  { %24 = sfence }
   0x6   :  { %v2010_v1 = vld [vmem:[%s3079_s2 + $0x20] sm:$0xff]  ;;  %v2015_v2 = vld [vmem:[%s3079_s2 + $0x10] sm:$0xff]  ;;  %v3088_v4 = vmov 0  }
   0x7   :  { %v2020_v3 = vld [vmem:[%s3079_s2] sm:$0xff]  ;;  %1848 = vset.pattern.permute.xlu2 %v3088_v4  ;;  %1847 = vset.pattern.permute.xlu1 %v3088_v4 }
   0x8   :  { %1846 = vset.pattern.permute.xlu0 %v3088_v4  ;;  %183 = vperm.xlu2 %1848, %v2010_v1  }
   0x9   :  { %173 = vperm.xlu1 %1847, %v2015_v2   ;;  %163 = vperm.xlu0 %1846, %v2020_v3  }
   0xa   :  { %25 = vsyncpa [#allocation6], 0  ;;  %v2031_v5 = vld [vmem:[%s3079_s2 + $0x28] sm:$0xff]  ;;  %v2036_v6 = vld [vmem:[%s3079_s2 + $0x18] sm:$0xff]  ;;  %v3091_v27 = vmov 2   ;;  %v3090_v28 = vmov 1  }
   0xb   :  { %v2041_v7 = vld [vmem:[%s3079_s2 + $0x8] sm:$0xff]  ;;  %v2049_v8 = vld [vmem:[%s3079_s2 + $0x40] sm:$0xff]  ;;  %v2054_v9 = vld [vmem:[%s3079_s2 + $0x38] sm:$0xff]  ;;  %v3093_v31 = vmov 3   ;;  %s1758_s23 = sld [smem:[#allocation3 + $0x1]] }
   0xc   :  { %v2059_v10 = vld [vmem:[%s3079_s2 + $0x30] sm:$0xff]  ;;  %v2067_v11 = vld [vmem:[%s3079_s2 + $0x58] sm:$0xff]  ;;  %v2077_v13 = vld [vmem:[%s3079_s2 + $0x48] sm:$0xff]  ;;  %s1759_s15 = sld [smem:[#allocation3 + $0x2]] }
   0xd   :  { %v2072_v12 = vld [vmem:[%s3079_s2 + $0x50] sm:$0xff]  ;;  %v2090_v15 = vld [vmem:[%s3079_s2 + $0x68] sm:$0xff]  ;;  %v2095_v16 = vld [vmem:[%s3079_s2 + $0x60] sm:$0xff] }
   0xe   :  { %v2085_v14 = vld [vmem:[%s3079_s2 + $0x70] sm:$0xff]  ;;  %v64_v17 = vld [vmem:[%s3080_s3 + $0x8] sm:$0xff]  ;;  %v63_v18 = vld [vmem:[%s3080_s3] sm:$0xff] }
   0xf   :  { %v62_v19 = vld [vmem:[%s3079_s2 + $0x78] sm:$0xff]  ;;  %v67_v20 = vld [vmem:[%s3080_s3 + $0x20] sm:$0xff]  ;;  %v65_v22 = vld [vmem:[%s3080_s3 + $0x10] sm:$0xff]  ;;  %s1749_s2 = sshll.u32 %s3086_s10, 4  ;;  %s1750_s2 = int_to_ptr.hbm [resolvable:$true] %s1749_s2 }
  0x10   :  { %188 = vperm.xlu2 %1848, %v2031_v5   ;;  %v66_v21 = vld [vmem:[%s3080_s3 + $0x18] sm:$0xff]  ;;  %v77_v24 = vld [vmem:[%s3080_s3 + $0x70] sm:$0xff]  ;;  %v68_v25 = vld [vmem:[%s3080_s3 + $0x28] sm:$0xff] }
  0x11   :  { %178 = vperm.xlu1 %1847, %v2036_v6   ;;  %168 = vperm.xlu0 %1846, %v2041_v7   ;;  %v78_v23 = vld [vmem:[%s3080_s3 + $0x78] sm:$0xff]  ;;  %v76_v26 = vld [vmem:[%s3080_s3 + $0x68] sm:$0xff]  ;;  %v71_v29 = vld [vmem:[%s3080_s3 + $0x40] sm:$0xff] }
  0x12   :  { %v75_v30 = vld [vmem:[%s3080_s3 + $0x60] sm:$0xff]  ;;  %v73_v34 = vld [vmem:[%s3080_s3 + $0x50] sm:$0xff]  ;;  %v74_v36 = vld [vmem:[%s3080_s3 + $0x58] sm:$0xff] }
  0x13   :  { %v2179_v40 = vld [vmem:[%s3078_s1] sm:$0xff]  ;;  %v72_v55 = vld [vmem:[%s3080_s3 + $0x48] sm:$0xff] }
  0x14   :  { %v242_v41 = vperm.slane %v2179_v40, 0  ;;  %v243_v42 = vperm.slane %v2179_v40, 4 }
  0x16   :  { %v2190_v46 = vperm.slane %v242_v41, 0  ;;  %v2192_v47 = vperm.slane %v243_v42, 0 }
  0x18   :  { %203 = vperm.xlu2 %1848, %v2049_v8  }
  0x19   :  { %198 = vperm.xlu1 %1847, %v2054_v9   ;;  %193 = vperm.xlu0 %1846, %v2059_v10  }
  0x20   :  { %218 = vperm.xlu2 %1848, %v2067_v11  }
  0x21   :  { %213 = vperm.xlu1 %1847, %v2072_v12   ;;  %208 = vperm.xlu0 %1846, %v2077_v13  }
  0x28   :  { %233 = vperm.xlu2 %1848, %v2085_v14  }
  0x29   :  { %228 = vperm.xlu1 %1847, %v2090_v15   ;;  %223 = vperm.xlu0 %1846, %v2095_v16  }
  0x30   :  { %287 = vperm.xlu2 %1848, %v64_v17  }
  0x31   :  { %282 = vperm.xlu1 %1847, %v63_v18   ;;  %238 = vperm.xlu0 %1846, %v62_v19  }
  0x38   :  { %302 = vperm.xlu2 %1848, %v67_v20  }
  0x39   :  { %297 = vperm.xlu1 %1847, %v66_v21   ;;  %292 = vperm.xlu0 %1846, %v65_v22  }
  0x40   :  { %357 = vperm.xlu2 %1848, %v78_v23  }
  0x41   :  { %352 = vperm.xlu1 %1847, %v77_v24   ;;  %307 = vperm.xlu0 %1846, %v68_v25  }
  0x48   :  { %1850 = vset.pattern.permute.xlu2 %v3091_v27 }
  0x49   :  { %1849 = vset.pattern.permute.xlu1 %v3090_v28  ;;  %347 = vperm.xlu0 %1846, %v76_v26  }
  0x4a   :  { %583 = vperm.xlu2 %1850, %v2085_v14   ;;  %453 = vperm.xlu1 %1849, %v62_v19  }
  0x51   :  { %322 = vperm.xlu0 %1846, %v71_v29  }
  0x52   :  { %1852 = vset.pattern.permute.xlu2 %v3088_v4  ;;  %1851 = vset.pattern.permute.xlu1 %v3091_v27 }
  0x53   :  { %342 = vperm.xlu2 %1852, %v75_v30   ;;  %587 = vperm.xlu1 %1851, %v62_v19   ;;  %v70_v30 = vld [vmem:[%s3080_s3 + $0x38] sm:$0xff] }
  0x59   :  { %1869 = vset.pattern.permute.xlu0 %v3093_v31 }
  0x5a   :  { %705 = vperm.xlu0 %1869, %v2067_v11  }
  0x5b   :  { %1854 = vset.pattern.permute.xlu2 %v3090_v28  ;;  %1853 = vset.pattern.permute.xlu1 %v3090_v28 }
  0x5c   :  { %445 = vperm.xlu2 %1854, %v2090_v15   ;;  %441 = vperm.xlu1 %1853, %v2095_v16  }
  0x62   :  { %1870 = vset.pattern.permute.xlu0 %v3091_v27  ;;  %v184_v32 = vpop.permute.xlu2 %183 }
  0x63   :  { %575 = vperm.xlu0 %1870, %v2095_v16   ;;  %v256_v56 = vmul.f32 %v2190_v46, %v184_v32  ;;  %v257_v57 = vmul.f32 %v2192_v47, %v184_v32 }
  0x64   :  { %1856 = vset.pattern.permute.xlu2 %v3093_v31  ;;  %1855 = vset.pattern.permute.xlu1 %v3093_v31 }
  0x65   :  { %721 = vperm.xlu2 %1856, %v62_v19   ;;  %717 = vperm.xlu1 %1855, %v2085_v14  }
  0x6a   :  { %v2152_v33 = vpop.permute.xlu2 %188 }
  0x6b   :  { %555 = vperm.xlu0 %1870, %v2054_v9  }
  0x6d   :  { %1858 = vset.pattern.permute.xlu2 %v3088_v4  ;;  %1857 = vset.pattern.permute.xlu1 %v3091_v27 }
  0x6e   :  { %332 = vperm.xlu2 %1858, %v73_v34   ;;  %579 = vperm.xlu1 %1857, %v2090_v15  }
  0x72   :  { %v2161_v35 = vpop.permute.xlu2 %203 }
  0x73   :  { %543 = vperm.xlu0 %1870, %v2010_v1  }
  0x76   :  { %1860 = vset.pattern.permute.xlu2 %v3090_v28  ;;  %1859 = vset.pattern.permute.xlu1 %v3088_v4 }
  0x77   :  { %433 = vperm.xlu2 %1860, %v2072_v12   ;;  %337 = vperm.xlu1 %1859, %v74_v36   ;;  %v69_v36 = vld [vmem:[%s3080_s3 + $0x30] sm:$0xff]  ;;  %s2358_s3 = sld [smem:[#allocation3]] }
  0x7a   :  { %v2170_v37 = vpop.permute.xlu2 %218 }
  0x7b   :  { %v2172_v38 = vpop.permute.xlu1 %173  ;;  %1883 = vset.pattern.permute.xlu0 %v3090_v28  ;;  %v164_v39 = vpop.permute.xlu0 %163 }
  0x7c   :  { %449 = vperm.xlu0 %1883, %v2085_v14   ;;  %v248_v14 = vmul.f32 %v2190_v46, %v164_v39  ;;  %v252_v24 = vmul.f32 %v2190_v46, %v2172_v38  ;;  %v253_v25 = vmul.f32 %v2192_v47, %v2172_v38 }
  0x7f   :  { %1862 = vset.pattern.permute.xlu2 %v3093_v31  ;;  %1861 = vset.pattern.permute.xlu1 %v3093_v31 }
  0x80   :  { %713 = vperm.xlu2 %1862, %v2090_v15   ;;  %709 = vperm.xlu1 %1861, %v2095_v16   ;;  %v249_v15 = vmul.f32 %v2192_v47, %v164_v39 }
  0x82   :  { %v2187_v43 = vpop.permute.xlu2 %233 }
  0x83   :  { %v179_v44 = vpop.permute.xlu1 %178  ;;  %v169_v45 = vpop.permute.xlu0 %168 }
  0x84   :  { %437 = vperm.xlu0 %1883, %v2067_v11   ;;  %v250_v48 = vmul.f32 %v2190_v46, %v169_v45  ;;  %v251_v49 = vmul.f32 %v2192_v47, %v169_v45  ;;  %v254_v26 = vmul.f32 %v2190_v46, %v179_v44  ;;  %v255_v29 = vmul.f32 %v2192_v47, %v179_v44 }
  0x85   :  { %v258_v45 = vmul.f32 %v2190_v46, %v2152_v33 }
  0x88   :  { %1864 = vset.pattern.permute.xlu2 %v3091_v27  ;;  %1863 = vset.pattern.permute.xlu1 %v3091_v27 }
  0x89   :  { %571 = vperm.xlu2 %1864, %v2067_v11   ;;  %567 = vperm.xlu1 %1863, %v2072_v12  }
  0x8a   :  { %v288_v50 = vpop.permute.xlu2 %287 }
  0x8b   :  { %v2200_v51 = vadd.f32 %v288_v50, %v250_v48  ;;  %v2202_v52 = vadd.f32 %v288_v50, %v251_v49  ;;  %v2204_v53 = vpop.permute.xlu1 %198  ;;  %v2206_v54 = vpop.permute.xlu0 %193  ;;  %v259_v48 = vmul.f32 %v2192_v47, %v2152_v33 }
  0x8c   :  { %417 = vperm.xlu0 %1883, %v2059_v10  }
  0x8d   :  { %3095 = vst [vmem:[#allocation9_spill] sm:$0xff] %v2200_v51 }
  0x8e   :  { %3096 = vst [vmem:[#allocation10_spill] sm:$0xff] %v2202_v52 }
  0x91   :  { %1866 = vset.pattern.permute.xlu2 %v3090_v28  ;;  %1865 = vset.pattern.permute.xlu1 %v3088_v4 }
  0x92   :  { %425 = vperm.xlu2 %1866, %v2049_v8   ;;  %327 = vperm.xlu1 %1865, %v72_v55   ;;  %v303_v58 = vpop.permute.xlu2 %302 }
  0x93   :  { %v2217_v59 = vadd.f32 %v303_v58, %v256_v56  ;;  %v2219_v60 = vadd.f32 %v303_v58, %v257_v57  ;;  %v2221_v61 = vpop.permute.xlu1 %213  ;;  %v2223_v62 = vpop.permute.xlu0 %208 }
  0x94   :  { %405 = vperm.xlu0 %1883, %v2036_v6  }
  0x9a   :  { %1868 = vset.pattern.permute.xlu2 %v3093_v31  ;;  %1867 = vset.pattern.permute.xlu1 %v3090_v28  ;;  %v358_v11 = vpop.permute.xlu2 %357 }
  0x9b   :  { %701 = vperm.xlu2 %1868, %v2072_v12   ;;  %429 = vperm.xlu1 %1867, %v2077_v13   ;;  %v2230_v63 = vpop.permute.xlu1 %228  ;;  %v2232_v0 = vpop.permute.xlu0 %223 }
  0x9c   :  { %393 = vperm.xlu0 %1883, %v2020_v3  }
  0xa3   :  { %1872 = vset.pattern.permute.xlu2 %v3091_v27  ;;  %1871 = vset.pattern.permute.xlu1 %v3091_v27  ;;  %v283_v16 = vpop.permute.xlu1 %282  ;;  %v239_v17 = vpop.permute.xlu0 %238 }
  0xa4   :  { %v2239_v12 = vadd.f32 %v283_v16, %v248_v14  ;;  %v2241_v18 = vadd.f32 %v283_v16, %v249_v15  ;;  %v278_v19 = vmul.f32 %v2190_v46, %v239_v17  ;;  %v279_v20 = vmul.f32 %v2192_v47, %v239_v17  ;;  %563 = vperm.xlu2 %1872, %v2077_v13   ;;  %v2246_v21 = vpop.permute.xlu2 %583 }
  0xa5   :  { %559 = vperm.xlu1 %1871, %v2049_v8   ;;  %1892 = vset.pattern.permute.xlu0 %v3093_v31  ;;  %v264_v14 = vmul.f32 %v2190_v46, %v2161_v35 }
  0xa6   :  { %3097 = vst [vmem:[#allocation11_spill] sm:$0xff] %v2239_v12  ;;  %v2250_v22 = vadd.f32 %v358_v11, %v278_v19  ;;  %v2252_v23 = vadd.f32 %v358_v11, %v279_v20  ;;  %673 = vperm.xlu0 %1892, %v2036_v6  }
  0xa7   :  { %3098 = vst [vmem:[#allocation12_spill] sm:$0xff] %v2241_v18 }
  0xab   :  { %v298_v32 = vpop.permute.xlu1 %297  ;;  %v293_v34 = vpop.permute.xlu0 %292 }
  0xac   :  { %v2267_v39 = vadd.f32 %v298_v32, %v254_v26  ;;  %v2269_v41 = vadd.f32 %v298_v32, %v255_v29  ;;  %v2271_v42 = vadd.f32 %v293_v34, %v252_v24  ;;  %v2273_v38 = vadd.f32 %v293_v34, %v253_v25  ;;  %1874 = vset.pattern.permute.xlu2 %v3088_v4 }
  0xad   :  { %1873 = vset.pattern.permute.xlu1 %v3088_v4  ;;  %317 = vperm.xlu2 %1874, %v70_v30   ;;  %v2277_v44 = vpop.permute.xlu2 %342  ;;  %v456_v25 = vperm.slane %v2179_v40, 1  ;;  %v457_v26 = vperm.slane %v2179_v40, 5  ;;  %v590_v32 = vperm.slane %v2179_v40, 2  ;;  %v591_v34 = vperm.slane %v2179_v40, 6 }
  0xae   :  { %3099 = vst [vmem:[#allocation13_spill] sm:$0xff] %v2267_v39  ;;  %312 = vperm.xlu1 %1873, %v69_v36   ;;  %1897 = vset.pattern.permute.xlu0 %v3088_v4 }
  0xaf   :  { %3100 = vst [vmem:[#allocation14_spill] sm:$0xff] %v2269_v41  ;;  %v2330_v36 = vperm.slane %v456_v25, 1 }
  0xb0   :  { %3101 = vst [vmem:[#allocation15_spill] sm:$0xff] %v2271_v42 }
  0xb1   :  { %3102 = vst [vmem:[#allocation16_spill] sm:$0xff] %v2273_v38 }
  0xb3   :  { %v2284_v49 = vpop.permute.xlu1 %352  ;;  %v308_v50 = vpop.permute.xlu0 %307 }
  0xb4   :  { %v2286_v55 = vadd.f32 %v308_v50, %v258_v45  ;;  %v2288_v56 = vadd.f32 %v308_v50, %v259_v48  ;;  %v2332_v45 = vperm.slane %v457_v26, 1  ;;  %v2340_v50 = vperm.slane %v590_v32, 2 }
  0xb5   :  { %1876 = vset.pattern.permute.xlu2 %v3093_v31  ;;  %v274_v32 = vmul.f32 %v2190_v46, %v2230_v63 }
  0xb6   :  { %3103 = vst [vmem:[#allocation17_spill] sm:$0xff] %v2288_v56  ;;  %1875 = vset.pattern.permute.xlu1 %v3090_v28  ;;  %693 = vperm.xlu2 %1876, %v2049_v8   ;;  %v446_v57 = vpop.permute.xlu2 %445  ;;  %v265_v8 = vmul.f32 %v2192_v47, %v2161_v35 }
  0xb7   :  { %421 = vperm.xlu1 %1875, %v2054_v9  }
  0xbb   :  { %v348_v58 = vpop.permute.xlu0 %347 }
  0xbc   :  { %v454_v11 = vpop.permute.xlu1 %453  ;;  %v386_v18 = vadd.f32 %v348_v58, %v274_v32 }
  0xbe   :  { %1878 = vset.pattern.permute.xlu2 %v3091_v27 }
  0xbf   :  { %1877 = vset.pattern.permute.xlu1 %v3093_v31  ;;  %551 = vperm.xlu2 %1878, %v2059_v10   ;;  %v722_v33 = vpop.permute.xlu2 %721 }
  0xc0   :  { %697 = vperm.xlu1 %1877, %v2077_v13  }
  0xc3   :  { %v323_v15 = vpop.permute.xlu0 %322 }
  0xc4   :  { %v2302_v16 = vadd.f32 %v323_v15, %v264_v14  ;;  %v2304_v17 = vadd.f32 %v323_v15, %v265_v8  ;;  %v2342_v14 = vperm.slane %v591_v34, 2  ;;  %v492_v8 = vmul.f32 %v2330_v36, %v454_v11 }
  0xc5   :  { %v588_v19 = vpop.permute.xlu1 %587  ;;  %v493_v15 = vmul.f32 %v2332_v45, %v454_v11  ;;  %v275_v34 = vmul.f32 %v2192_v47, %v2230_v63  ;;  %v3104_v63 = vmov 3  }
  0xc6   :  { %v626_v4 = vmul.f32 %v2340_v50, %v588_v19  ;;  %v524_v11 = vadd.f32 %v492_v8, %v2250_v22 }
  0xc7   :  { %1880 = vset.pattern.permute.xlu2 %v3090_v28  ;;  %v387_v12 = vadd.f32 %v348_v58, %v275_v34  ;;  %v272_v58 = vmul.f32 %v2190_v46, %v2232_v0 }
  0xc8   :  { %1879 = vset.pattern.permute.xlu1 %v3090_v28  ;;  %413 = vperm.xlu2 %1880, %v2031_v5   ;;  %v2309_v20 = vpop.permute.xlu2 %332  ;;  %v658_v51 = vadd.f32 %v626_v4, %v524_v11  ;;  %v269_v11 = vmul.f32 %v2192_v47, %v2221_v61 }
  0xc9   :  { %409 = vperm.xlu1 %1879, %v2010_v1  }
  0xcc   :  { %v2312_v13 = vpop.permute.xlu0 %705 }
  0xce   :  { %v2314_v24 = vpop.permute.xlu1 %441 }
  0xd0   :  { %1882 = vset.pattern.permute.xlu2 %v3093_v31 }
  0xd1   :  { %1881 = vset.pattern.permute.xlu1 %v3093_v31  ;;  %689 = vperm.xlu2 %1882, %v2054_v9   ;;  %v2319_v35 = vpop.permute.xlu2 %433  ;;  %v724_v9 = vperm.slane %v2179_v40, 3  ;;  %v489_v31 = vmul.f32 %v2332_v45, %v446_v57 }
  0xd2   :  { %685 = vperm.xlu1 %1881, %v2059_v10   ;;  %v725_v10 = vperm.slane %v2179_v40, 7 }
  0xd3   :  { %v2348_v26 = vperm.slane %v724_v9, 3 }
  0xd4   :  { %v2350_v40 = vperm.slane %v725_v10, 3  ;;  %v488_v10 = vmul.f32 %v2330_v36, %v446_v57  ;;  %v2377_v57 = vmul.f32 %v2192_v47, %v2170_v37 }
  0xd5   :  { %v2324_v29 = vpop.permute.xlu0 %575 }
  0xd6   :  { %v761_v52 = vmul.f32 %v2350_v40, %v722_v33  ;;  %v520_v8 = vadd.f32 %v488_v10, %v386_v18 }
  0xd7   :  { %v2326_v30 = vpop.permute.xlu1 %717 }
  0xd9   :  { %1885 = vset.pattern.permute.xlu2 %v3090_v28  ;;  %v627_v28 = vmul.f32 %v2342_v14, %v588_v19  ;;  %v760_v19 = vmul.f32 %v2348_v26, %v722_v33 }
  0xda   :  { %1884 = vset.pattern.permute.xlu1 %v3091_v27  ;;  %401 = vperm.xlu2 %1885, %v2015_v2   ;;  %v714_v48 = vpop.permute.xlu2 %713  ;;  %v525_v27 = vadd.f32 %v493_v15, %v2252_v23  ;;  %v2373_v23 = vmul.f32 %v2190_v46, %v2170_v37  ;;  %v273_v37 = vmul.f32 %v2192_v47, %v2232_v0 }
  0xdb   :  { %547 = vperm.xlu1 %1884, %v2031_v5   ;;  %v521_v15 = vadd.f32 %v489_v31, %v387_v12  ;;  %v792_v32 = vadd.f32 %v760_v19, %v658_v51  ;;  %v756_v42 = vmul.f32 %v2348_v26, %v714_v48  ;;  %v757_v0 = vmul.f32 %v2350_v40, %v714_v48 }
  0xdc   :  { %v659_v38 = vadd.f32 %v627_v28, %v525_v27  ;;  %v277_v28 = vmul.f32 %v2192_v47, %v2187_v43  ;;  %v625_v31 = vmul.f32 %v2342_v14, %v2246_v21  ;;  %v384_v51 = vadd.f32 %v2277_v44, %v272_v58 }
  0xdd   :  { %v2346_v25 = vpop.permute.xlu0 %555  ;;  %vm824_vm0 = vcmp.gt.f32.partialorder %v792_v32, 0.0  ;;  %v486_v48 = vmul.f32 %v2330_v36, %v2314_v24  ;;  %v381_v58 = vadd.f32 %v2309_v20, %v269_v11 }
  0xde   :  { %v793_v34 = vadd.f32 %v761_v52, %v659_v38  ;;  %v385_v52 = vadd.f32 %v2277_v44, %v273_v37  ;;  %v389_v38 = vadd.f32 %v2284_v49, %v277_v28  ;;  %v3105_v44 = vmov 2  }
  0xdf   :  { %v2430_v37 = vmul.f32 %v2350_v40, %v2312_v13 }
  0xe0   :  { %v580_v9 = vpop.permute.xlu1 %579  ;;  %vm825_vm1 = vcmp.gt.f32.partialorder %v793_v34, 0.0 }
  0xe1   :  { %v622_v4 = vmul.f32 %v2340_v50, %v580_v9  ;;  %v623_v27 = vmul.f32 %v2342_v14, %v580_v9  ;;  %v2399_v9 = vstv %s2358_s3 }
  0xe2   :  { %1887 = vset.pattern.permute.xlu2 %v3104_v63  ;;  %v857_v10 = vmul.f32 %v2399_v9, %v792_v32  ;;  %v858_v19 = vmul.f32 %v2399_v9, %v793_v34 }
  0xe3   :  { %1886 = vset.pattern.permute.xlu1 %v3104_v63  ;;  %681 = vperm.xlu2 %1887, %v2031_v5   ;;  %v2369_v22 = vpop.permute.xlu2 %571  ;;  %v276_v5 = vmul.f32 %v2190_v46, %v2187_v43  ;;  %v624_v43 = vmul.f32 %v2340_v50, %v2246_v21  ;;  %v654_v41 = vadd.f32 %v622_v4, %v520_v8 }
  0xe4   :  { %677 = vperm.xlu1 %1886, %v2010_v1   ;;  %v268_v1 = vmul.f32 %v2190_v46, %v2221_v61  ;;  %v655_v18 = vadd.f32 %v623_v27, %v521_v15  ;;  %v487_v21 = vmul.f32 %v2332_v45, %v2314_v24  ;;  %v482_v4 = vmul.f32 %v2330_v36, %v2319_v35 }
  0xe5   :  { %v2390_v33 = vpop.permute.xlu0 %543  ;;  %v388_v61 = vadd.f32 %v2284_v49, %v276_v5  ;;  %v483_v49 = vmul.f32 %v2332_v45, %v2319_v35  ;;  %v788_v27 = vadd.f32 %v756_v42, %v654_v41  ;;  %v2426_v24 = vmul.f32 %v2348_v26, %v2312_v13 }
  0xe6   :  { %v789_v5 = vadd.f32 %v757_v0, %v655_v18  ;;  %v380_v28 = vadd.f32 %v2309_v20, %v268_v1  ;;  %v620_v41 = vmul.f32 %v2340_v50, %v2324_v29  ;;  %v2440_v20 = vsel %vm824_vm0, %v792_v32, %v857_v10 }
  0xe7   :  { %v2443_v35 = vsel %vm825_vm1, %v793_v34, %v858_v19  ;;  %v518_v15 = vadd.f32 %v486_v48, %v384_v51  ;;  %v519_v13 = vadd.f32 %v487_v21, %v385_v52  ;;  %v2449_v18 = vadd.f32 %v483_v49, %v381_v58 }
  0xe8   :  { %v2447_v0 = vadd.f32 %v482_v4, %v380_v28  ;;  %v853_v39 = vmul.f32 %v2399_v9, %v788_v27  ;;  %vm820_vm2 = vcmp.gt.f32.partialorder %v788_v27, 0.0  ;;  %vm821_vm3 = vcmp.gt.f32.partialorder %v789_v5, 0.0 }
  0xe9   :  { %v338_v12 = vpop.permute.xlu1 %337  ;;  %v652_v34 = vadd.f32 %v620_v41, %v518_v15  ;;  %v758_v51 = vmul.f32 %v2348_v26, %v2326_v30  ;;  %v759_v52 = vmul.f32 %v2350_v40, %v2326_v30  ;;  %v3106_v30 = vmov 1  }
  0xea   :  { %v885_v28 = vsel %vm820_vm2, %v788_v27, %v853_v39  ;;  %v383_v15 = vadd.f32 %v338_v12, %v2377_v57 }
  0xeb   :  { %1889 = vset.pattern.permute.xlu2 %v3105_v44 }
  0xec   :  { %1888 = vset.pattern.permute.xlu1 %v3105_v44  ;;  %539 = vperm.xlu2 %1889, %v2036_v6   ;;  %v2432_v8 = vpop.permute.xlu2 %425  ;;  %v621_v6 = vmul.f32 %v2342_v14, %v2324_v29  ;;  %v854_v29 = vmul.f32 %v2399_v9, %v789_v5 }
  0xed   :  { %535 = vperm.xlu1 %1888, %v2015_v2  }
  0xee   :  { %v450_v42 = vpop.permute.xlu0 %449  ;;  %v653_v10 = vadd.f32 %v621_v6, %v519_v13  ;;  %v886_v58 = vsel %vm821_vm3, %v789_v5, %v854_v29 }
  0xef   :  { %v490_v1 = vmul.f32 %v2330_v36, %v450_v42  ;;  %v491_v11 = vmul.f32 %v2332_v45, %v450_v42  ;;  %v382_v42 = vadd.f32 %v338_v12, %v2373_v23 }
  0xf1   :  { %v522_v56 = vadd.f32 %v490_v1, %v388_v61  ;;  %v523_v32 = vadd.f32 %v491_v11, %v389_v38  ;;  %v618_v61 = vmul.f32 %v2340_v50, %v2369_v22  ;;  %v619_v38 = vmul.f32 %v2342_v14, %v2369_v22 }
  0xf2   :  { %v710_v19 = vpop.permute.xlu1 %709 }
  0xf3   :  { %v656_v48 = vadd.f32 %v624_v43, %v522_v56  ;;  %v657_v21 = vadd.f32 %v625_v31, %v523_v32  ;;  %v754_v4 = vmul.f32 %v2348_v26, %v710_v19  ;;  %v755_v49 = vmul.f32 %v2350_v40, %v710_v19 }
  0xf4   :  { %1891 = vset.pattern.permute.xlu2 %v3104_v63 }
  0xf5   :  { %v786_v41 = vadd.f32 %v754_v4, %v652_v34  ;;  %v787_v6 = vadd.f32 %v755_v49, %v653_v10  ;;  %1890 = vset.pattern.permute.xlu1 %v3106_v30  ;;  %v702_v56 = vpop.permute.xlu2 %701  ;;  %v790_v43 = vadd.f32 %v758_v51, %v656_v48  ;;  %v791_v31 = vadd.f32 %v759_v52, %v657_v21 }
  0xf6   :  { %397 = vperm.xlu1 %1890, %v2041_v7   ;;  %v438_v13 = vpop.permute.xlu0 %437  ;;  %v750_v22 = vmul.f32 %v2348_v26, %v702_v56  ;;  %669 = vperm.xlu2 %1891, %v2015_v2   ;;  %v751_v21 = vmul.f32 %v2350_v40, %v702_v56 }
  0xf7   :  { %v484_v39 = vmul.f32 %v2330_v36, %v438_v13  ;;  %v485_v27 = vmul.f32 %v2332_v45, %v438_v13  ;;  %vm822_vm4 = vcmp.gt.f32.partialorder %v790_v43, 0.0  ;;  %v855_v5 = vmul.f32 %v2399_v9, %v790_v43 }
  0xf8   :  { %vm823_vm5 = vcmp.gt.f32.partialorder %v791_v31, 0.0  ;;  %v856_v1 = vmul.f32 %v2399_v9, %v791_v31  ;;  %vm818_vm6 = vcmp.gt.f32.partialorder %v786_v41, 0.0  ;;  %v851_v23 = vmul.f32 %v2399_v9, %v786_v41 }
  0xf9   :  { %v516_v57 = vadd.f32 %v484_v39, %v382_v42  ;;  %v517_v12 = vadd.f32 %v485_v27, %v383_v15  ;;  %v887_v11 = vsel %vm822_vm4, %v790_v43, %v855_v5  ;;  %vm819_vm7 = vcmp.gt.f32.partialorder %v787_v6, 0.0 }
  0xfa   :  { %v905_v29 = vpack.c.bf16 %v2440_v20, %v887_v11  ;;  %v888_v2 = vsel %vm823_vm5, %v791_v31, %v856_v1  ;;  %v883_v32 = vsel %vm818_vm6, %v786_v41, %v851_v23  ;;  %v852_v34 = vmul.f32 %v2399_v9, %v787_v6 }
  0xfb   :  { %v650_v10 = vadd.f32 %v618_v61, %v516_v57  ;;  %v651_v51 = vadd.f32 %v619_v38, %v517_v12  ;;  %v568_v52 = vpop.permute.xlu1 %567  ;;  %v906_v19 = vpack.c.bf16 %v2443_v35, %v888_v2  ;;  %v903_v48 = vpack.c.bf16 %v885_v28, %v883_v32 }
  0xfc   :  { %v616_v4 = vmul.f32 %v2340_v50, %v568_v52  ;;  %v617_v49 = vmul.f32 %v2342_v14, %v568_v52  ;;  %1035 = vmatpush.bf16.msra.mxu0 %v905_v29  ;;  %v884_v30 = vsel %vm819_vm7, %v787_v6, %v852_v34  ;;  %v3107_v39 = vmov 0  }
  0xfd   :  { %1084 = vmatpush.bf16.msra.mxu1 %v906_v19  ;;  %v904_v20 = vpack.c.bf16 %v886_v58, %v884_v30  ;;  %v784_v41 = vadd.f32 %v2426_v24, %v650_v10  ;;  %v785_v43 = vadd.f32 %v2430_v37, %v651_v51  ;;  %v266_v12 = vmul.f32 %v2190_v46, %v2223_v62 }
  0xfe   :  { %v648_v61 = vadd.f32 %v616_v4, %v2447_v0  ;;  %v649_v38 = vadd.f32 %v617_v49, %v2449_v18  ;;  %1893 = vset.pattern.permute.xlu1 %v3105_v44  ;;  %1894 = vset.pattern.permute.xlu2 %v3105_v44  ;;  %v564_v13 = vpop.permute.xlu2 %563  ;;  %v479_v11 = vmul.f32 %v2332_v45, %v2432_v8 }
  0xff   :  { %527 = vperm.xlu1 %1893, %v2020_v3   ;;  %v849_v6 = vmul.f32 %v2399_v9, %v784_v41  ;;  %531 = vperm.xlu2 %1894, %v2041_v7   ;;  %vm816_vm8 = vcmp.gt.f32.partialorder %v784_v41, 0.0  ;;  %v850_v24 = vmul.f32 %v2399_v9, %v785_v43  ;;  %vm817_vm11 = vcmp.gt.f32.partialorder %v785_v43, 0.0 }
 0x100   :  { %v782_v35 = vadd.f32 %v750_v22, %v648_v61  ;;  %v783_v28 = vadd.f32 %v751_v21, %v649_v38  ;;  %1036 = vmatpush.bf16.msra.mxu0 %v903_v48  ;;  %v610_v29 = vmul.f32 %v2340_v50, %v2346_v25  ;;  %v611_v2 = vmul.f32 %v2342_v14, %v2346_v25 }
 0x101   :  { %1085 = vmatpush.bf16.msra.mxu1 %v904_v20  ;;  %v881_v58 = vsel %vm816_vm8, %v784_v41, %v849_v6  ;;  %v882_v42 = vsel %vm817_vm11, %v785_v43, %v850_v24  ;;  %v511_v4 = vadd.f32 %v479_v11, %v2304_v17  ;;  %v615_v6 = vmul.f32 %v2342_v14, %v564_v13 }
 0x102   :  { %vm814_vm9 = vcmp.gt.f32.partialorder %v782_v35, 0.0  ;;  %v847_v37 = vmul.f32 %v2399_v9, %v782_v35  ;;  %vm815_vm10 = vcmp.gt.f32.partialorder %v783_v28, 0.0  ;;  %v848_v44 = vmul.f32 %v2399_v9, %v783_v28 }
 0x104   :  { %v328_v0 = vpop.permute.xlu1 %327  ;;  %v879_v18 = vsel %vm814_vm9, %v782_v35, %v847_v37  ;;  %v880_v31 = vsel %vm815_vm10, %v783_v28, %v848_v44 }
 0x105   :  { %v901_v56 = vpack.c.bf16 %v881_v58, %v879_v18  ;;  %v902_v15 = vpack.c.bf16 %v882_v42, %v880_v31  ;;  %v378_v20 = vadd.f32 %v328_v0, %v266_v12 }
 0x107   :  { %1895 = vset.pattern.permute.xlu1 %v3104_v63  ;;  %1037 = vmatpush.bf16.msra.mxu0 %v901_v56  ;;  %v318_v27 = vpop.permute.xlu2 %317 }
 0x108   :  { %661 = vperm.xlu1 %1895, %v2020_v3   ;;  %1086 = vmatpush.bf16.msra.mxu1 %v902_v15  ;;  %v262_v3 = vmul.f32 %v2190_v46, %v2204_v53 }
 0x109   :  { %1896 = vset.pattern.permute.xlu2 %v3104_v63  ;;  %v478_v63 = vmul.f32 %v2330_v36, %v2432_v8  ;;  %v267_v8 = vmul.f32 %v2192_v47, %v2223_v62 }
 0x10a   :  { %665 = vperm.xlu2 %1896, %v2041_v7   ;;  %v263_v7 = vmul.f32 %v2192_v47, %v2204_v53  ;;  %v374_v32 = vadd.f32 %v318_v27, %v262_v3  ;;  %v418_v3 = vpop.permute.xlu0 %417 }
 0x10b   :  { %v510_v48 = vadd.f32 %v478_v63, %v2302_v16  ;;  %v379_v41 = vadd.f32 %v328_v0, %v267_v8  ;;  %v614_v16 = vmul.f32 %v2340_v50, %v564_v13 }
 0x10c   :  { %v375_v51 = vadd.f32 %v318_v27, %v263_v7 }
 0x10d   :  { %v430_v22 = vpop.permute.xlu1 %429 }
 0x10e   :  { %v480_v21 = vmul.f32 %v2330_v36, %v430_v22  ;;  %v481_v25 = vmul.f32 %v2332_v45, %v430_v22 }
 0x110   :  { %1898 = vset.pattern.permute.xlu1 %v3107_v39  ;;  %v694_v1 = vpop.permute.xlu2 %693  ;;  %v512_v24 = vadd.f32 %v480_v21, %v378_v20  ;;  %v513_v37 = vadd.f32 %v481_v25, %v379_v41 }
 0x111   :  { %v746_v43 = vmul.f32 %v2348_v26, %v694_v1  ;;  %v747_v38 = vmul.f32 %v2350_v40, %v694_v1 }
 0x112   :  { %1899 = vset.pattern.permute.xlu2 %v3107_v39  ;;  %v646_v0 = vadd.f32 %v614_v16, %v512_v24  ;;  %v647_v56 = vadd.f32 %v615_v6, %v513_v37 }
 0x117   :  { %v560_v5 = vpop.permute.xlu1 %559 }
 0x118   :  { %v612_v34 = vmul.f32 %v2340_v50, %v560_v5  ;;  %v613_v52 = vmul.f32 %v2342_v14, %v560_v5 }
 0x119   :  { %v2501_v57 = vpop.permute.xlu2 %551 }
 0x11a   :  { %v644_v61 = vadd.f32 %v612_v34, %v510_v48  ;;  %v645_v35 = vadd.f32 %v613_v52, %v511_v4  ;;  %v609_v20 = vmul.f32 %v2342_v14, %v2501_v57 }
 0x11c   :  { %v778_v17 = vadd.f32 %v746_v43, %v644_v61  ;;  %v779_v18 = vadd.f32 %v747_v38, %v645_v35 }
 0x11e   :  { %v843_v39 = vmul.f32 %v2399_v9, %v778_v17  ;;  %vm810_vm12 = vcmp.gt.f32.partialorder %v778_v17, 0.0  ;;  %v844_v13 = vmul.f32 %v2399_v9, %v779_v18  ;;  %vm811_vm14 = vcmp.gt.f32.partialorder %v779_v18, 0.0 }
 0x120   :  { %v2499_v23 = vpop.permute.xlu1 %312  ;;  %v875_v63 = vsel %vm810_vm12, %v778_v17, %v843_v39  ;;  %v876_v11 = vsel %vm811_vm14, %v779_v18, %v844_v13 }
 0x122   :  { %v2531_v44 = vpop.permute.xlu2 %413 }
 0x129   :  { %v422_v10 = vpop.permute.xlu1 %421 }
 0x12a   :  { %v476_v53 = vmul.f32 %v2330_v36, %v422_v10  ;;  %v477_v19 = vmul.f32 %v2332_v45, %v422_v10 }
 0x12b   :  { %v690_v27 = vpop.permute.xlu2 %689 }
 0x12c   :  { %v508_v49 = vadd.f32 %v476_v53, %v374_v32  ;;  %v509_v30 = vadd.f32 %v477_v19, %v375_v51  ;;  %v261_v32 = vmul.f32 %v2192_v47, %v2206_v54  ;;  %v474_v53 = vmul.f32 %v2330_v36, %v418_v3 }
 0x12d   :  { %v475_v19 = vmul.f32 %v2332_v45, %v418_v3  ;;  %v605_v47 = vmul.f32 %v2342_v14, %v2390_v33  ;;  %v744_v25 = vmul.f32 %v2348_v26, %v690_v27  ;;  %v745_v4 = vmul.f32 %v2350_v40, %v690_v27 }
 0x12e   :  { %v642_v28 = vadd.f32 %v610_v29, %v508_v49  ;;  %v643_v62 = vadd.f32 %v611_v2, %v509_v30  ;;  %v260_v2 = vmul.f32 %v2190_v46, %v2206_v54  ;;  %v373_v48 = vadd.f32 %v2499_v23, %v261_v32 }
 0x12f   :  { %v604_v46 = vmul.f32 %v2340_v50, %v2390_v33 }
 0x130   :  { %v372_v8 = vadd.f32 %v2499_v23, %v260_v2  ;;  %v608_v23 = vmul.f32 %v2340_v50, %v2501_v57  ;;  %v507_v33 = vadd.f32 %v475_v19, %v373_v48  ;;  %v776_v61 = vadd.f32 %v744_v25, %v642_v28 }
 0x132   :  { %v698_v58 = vpop.permute.xlu1 %697  ;;  %v506_v41 = vadd.f32 %v474_v53, %v372_v8  ;;  %v641_v16 = vadd.f32 %v609_v20, %v507_v33  ;;  %v841_v18 = vmul.f32 %v2399_v9, %v776_v61  ;;  %vm808_vm0 = vcmp.gt.f32.partialorder %v776_v61, 0.0 }
 0x133   :  { %v748_v31 = vmul.f32 %v2348_v26, %v698_v58  ;;  %v749_v42 = vmul.f32 %v2350_v40, %v698_v58 }
 0x134   :  { %v402_v43 = vpop.permute.xlu2 %401  ;;  %v640_v35 = vadd.f32 %v608_v23, %v506_v41 }
 0x135   :  { %v780_v15 = vadd.f32 %v748_v31, %v646_v0  ;;  %v781_v22 = vadd.f32 %v749_v42, %v647_v56  ;;  %v473_v56 = vmul.f32 %v2332_v45, %v2531_v44  ;;  %v873_v42 = vsel %vm808_vm0, %v776_v61, %v841_v18 }
 0x136   :  { %v466_v20 = vmul.f32 %v2330_v36, %v402_v43  ;;  %v467_v41 = vmul.f32 %v2332_v45, %v402_v43 }
 0x137   :  { %vm812_vm13 = vcmp.gt.f32.partialorder %v780_v15, 0.0  ;;  %v845_v5 = vmul.f32 %v2399_v9, %v780_v15  ;;  %vm813_vm15 = vcmp.gt.f32.partialorder %v781_v22, 0.0  ;;  %v846_v1 = vmul.f32 %v2399_v9, %v781_v22 }
 0x139   :  { %v877_v7 = vsel %vm812_vm13, %v780_v15, %v845_v5  ;;  %v878_v29 = vsel %vm813_vm15, %v781_v22, %v846_v1 }
 0x13a   :  { %v899_v12 = vpack.c.bf16 %v877_v7, %v875_v63  ;;  %v900_v10 = vpack.c.bf16 %v878_v29, %v876_v11  ;;  %v3108_v7 = vld [vmem:[#allocation17_spill] sm:$0xff] }
 0x13b   :  { %v410_v34 = vpop.permute.xlu1 %409 }
 0x13c   :  { %v470_v51 = vmul.f32 %v2330_v36, %v410_v34  ;;  %v471_v52 = vmul.f32 %v2332_v45, %v410_v34  ;;  %1038 = vmatpush.bf16.msra.mxu0 %v899_v12  ;;  %1087 = vmatpush.bf16.msra.mxu1 %v900_v10  ;;  %v505_v12 = vadd.f32 %v473_v56, %v3108_v7  ;;  %v101_v7 = vld [vmem:[%s3082_s5 + $0x30] sm:$0xff] }
 0x13d   :  { %v682_v58 = vpop.permute.xlu2 %681 }
 0x13e   :  { %v502_v54 = vadd.f32 %v470_v51, %v2217_v59  ;;  %v503_v21 = vadd.f32 %v471_v52, %v2219_v60  ;;  %v406_v59 = vpop.permute.xlu0 %405  ;;  %v777_v60 = vadd.f32 %v745_v4, %v643_v62  ;;  %v472_v62 = vmul.f32 %v2330_v36, %v2531_v44  ;;  %v110_v51 = vld [vmem:[%s3082_s5 + $0x78] sm:$0xff] }
 0x13f   :  { %v740_v44 = vmul.f32 %v2348_v26, %v682_v58  ;;  %v741_v11 = vmul.f32 %v2350_v40, %v682_v58  ;;  %v468_v32 = vmul.f32 %v2330_v36, %v406_v59  ;;  %v469_v34 = vmul.f32 %v2332_v45, %v406_v59  ;;  %984 = vperm.xlu1 %1898, %v110_v51   ;;  %v3111_v58 = vld [vmem:[#allocation15_spill] sm:$0xff] }
 0x140   :  { %v2557_v49 = vadd.f32 %v604_v46, %v502_v54  ;;  %v2559_v30 = vadd.f32 %v605_v47, %v503_v21  ;;  %v842_v57 = vmul.f32 %v2399_v9, %v777_v60  ;;  %vm809_vm2 = vcmp.gt.f32.partialorder %v777_v60, 0.0  ;;  %v3109_v47 = vld [vmem:[#allocation13_spill] sm:$0xff]  ;;  %v3110_v21 = vld [vmem:[#allocation14_spill] sm:$0xff] }
 0x141   :  { %v504_v63 = vadd.f32 %v472_v62, %v2286_v55  ;;  %v109_v55 = vld [vmem:[%s3082_s5 + $0x70] sm:$0xff]  ;;  %v500_v54 = vadd.f32 %v468_v32, %v3109_v47  ;;  %v501_v25 = vadd.f32 %v469_v34, %v3110_v21  ;;  %v102_v47 = vld [vmem:[%s3082_s5 + $0x38] sm:$0xff] }
 0x142   :  { %v874_v39 = vsel %vm809_vm2, %v777_v60, %v842_v57  ;;  %979 = vperm.xlu0 %1897, %v109_v55  }
 0x144   :  { %v686_v38 = vpop.permute.xlu1 %685 }
 0x145   :  { %v742_v6 = vmul.f32 %v2348_v26, %v686_v38  ;;  %v743_v24 = vmul.f32 %v2350_v40, %v686_v38 }
 0x146   :  { %v2575_v13 = vpop.permute.xlu0 %393  ;;  %v540_v10 = vpop.permute.xlu2 %539 }
 0x147   :  { %v774_v37 = vadd.f32 %v742_v6, %v640_v35  ;;  %v775_v17 = vadd.f32 %v743_v24, %v641_v16  ;;  %v602_v8 = vmul.f32 %v2340_v50, %v540_v10  ;;  %v603_v48 = vmul.f32 %v2342_v14, %v540_v10  ;;  %v108_v16 = vld [vmem:[%s3082_s5 + $0x68] sm:$0xff] }
 0x148   :  { %974 = vperm.xlu1 %1898, %v108_v16   ;;  %v462_v16 = vmul.f32 %v2330_v36, %v2575_v13 }
 0x149   :  { %vm806_vm1 = vcmp.gt.f32.partialorder %v774_v37, 0.0  ;;  %v839_v0 = vmul.f32 %v2399_v9, %v774_v37  ;;  %vm807_vm3 = vcmp.gt.f32.partialorder %v775_v17, 0.0  ;;  %v840_v28 = vmul.f32 %v2399_v9, %v775_v17 }
 0x14a   :  { %v634_v6 = vadd.f32 %v602_v8, %v500_v54  ;;  %v635_v24 = vadd.f32 %v603_v48, %v501_v25  ;;  %v100_v54 = vld [vmem:[%s3082_s5 + $0x28] sm:$0xff] }
 0x14b   :  { %v871_v31 = vsel %vm806_vm1, %v774_v37, %v839_v0  ;;  %v872_v22 = vsel %vm807_vm3, %v775_v17, %v840_v28  ;;  %v498_v0 = vadd.f32 %v466_v20, %v3111_v58  ;;  %v3113_v20 = vld [vmem:[#allocation9_spill] sm:$0xff] }
 0x14c   :  { %v897_v15 = vpack.c.bf16 %v873_v42, %v871_v31  ;;  %v898_v5 = vpack.c.bf16 %v874_v39, %v872_v22  ;;  %v3112_v31 = vld [vmem:[#allocation16_spill] sm:$0xff] }
 0x14d   :  { %v548_v27 = vpop.permute.xlu1 %547  ;;  %v499_v42 = vadd.f32 %v467_v41, %v3112_v31 }
 0x14e   :  { %v606_v1 = vmul.f32 %v2340_v50, %v548_v27  ;;  %v607_v3 = vmul.f32 %v2342_v14, %v548_v27  ;;  %1039 = vmatpush.bf16.msra.mxu0 %v897_v15  ;;  %1088 = vmatpush.bf16.msra.mxu1 %v898_v5  ;;  %v674_v52 = vpop.permute.xlu0 %673 }
 0x14f   :  { %v736_v33 = vmul.f32 %v2348_v26, %v674_v52  ;;  %v737_v59 = vmul.f32 %v2350_v40, %v674_v52 }
 0x150   :  { %v638_v29 = vadd.f32 %v606_v1, %v504_v63  ;;  %v639_v2 = vadd.f32 %v607_v3, %v505_v12  ;;  %v670_v28 = vpop.permute.xlu2 %669  ;;  %v103_v63 = vld [vmem:[%s3082_s5 + $0x40] sm:$0xff] }
 0x151   :  { %v768_v15 = vadd.f32 %v736_v33, %v634_v6  ;;  %v769_v22 = vadd.f32 %v737_v59, %v635_v24  ;;  %v734_v39 = vmul.f32 %v2348_v26, %v670_v28  ;;  %v735_v5 = vmul.f32 %v2350_v40, %v670_v28  ;;  %949 = vperm.xlu1 %1898, %v103_v63   ;;  %v3114_v33 = vld [vmem:[#allocation10_spill] sm:$0xff] }
 0x152   :  { %v772_v53 = vadd.f32 %v740_v44, %v638_v29  ;;  %v773_v19 = vadd.f32 %v741_v11, %v639_v2  ;;  %v463_v6 = vmul.f32 %v2332_v45, %v2575_v13  ;;  %v96_v28 = vld [vmem:[%s3082_s5 + $0x8] sm:$0xff] }
 0x153   :  { %v833_v11 = vmul.f32 %v2399_v9, %v768_v15  ;;  %v834_v32 = vmul.f32 %v2399_v9, %v769_v22  ;;  %vm800_vm8 = vcmp.gt.f32.partialorder %v768_v15, 0.0  ;;  %vm801_vm9 = vcmp.gt.f32.partialorder %v769_v22, 0.0 }
 0x154   :  { %v837_v38 = vmul.f32 %v2399_v9, %v772_v53  ;;  %v838_v35 = vmul.f32 %v2399_v9, %v773_v19  ;;  %vm804_vm4 = vcmp.gt.f32.partialorder %v772_v53, 0.0  ;;  %vm805_vm5 = vcmp.gt.f32.partialorder %v773_v19, 0.0 }
 0x155   :  { %v866_v8 = vsel %vm801_vm9, %v769_v22, %v834_v32  ;;  %v1825_v32 = vld [vmem:[%s3081_s4 + $0x8] sm:$0xff] }
 0x156   :  { %v678_v46 = vpop.permute.xlu1 %677  ;;  %v869_v17 = vsel %vm804_vm4, %v772_v53, %v837_v38  ;;  %v870_v57 = vsel %vm805_vm5, %v773_v19, %v838_v35  ;;  %v865_v53 = vsel %vm800_vm8, %v768_v15, %v833_v11  ;;  %v95_v38 = vld [vmem:[%s3082_s5] sm:$0xff]  ;;  %v128_v11 = vld [vmem:[%s3084_s7 + $0x8] sm:$0xff] }
 0x157   :  { %v738_v4 = vmul.f32 %v2348_v26, %v678_v46  ;;  %v739_v23 = vmul.f32 %v2350_v40, %v678_v46 }
 0x159   :  { %v770_v61 = vadd.f32 %v738_v4, %v2557_v49  ;;  %v771_v60 = vadd.f32 %v739_v23, %v2559_v30  ;;  %v106_v30 = vld [vmem:[%s3082_s5 + $0x58] sm:$0xff]  ;;  %v532_v51 = vpop.permute.xlu2 %531  ;;  %944 = vperm.xlu1 %1898, %v102_v47  }
 0x15a   :  { %964 = vperm.xlu0 %1897, %v106_v30   ;;  %v598_v4 = vmul.f32 %v2340_v50, %v532_v51  ;;  %v599_v23 = vmul.f32 %v2342_v14, %v532_v51  ;;  %v131_v51 = vld [vmem:[%s3084_s7 + $0x20] sm:$0xff]  ;;  %v130_v47 = vld [vmem:[%s3084_s7 + $0x18] sm:$0xff] }
 0x15b   :  { %vm802_vm6 = vcmp.gt.f32.partialorder %v770_v61, 0.0  ;;  %v835_v43 = vmul.f32 %v2399_v9, %v770_v61  ;;  %vm803_vm7 = vcmp.gt.f32.partialorder %v771_v60, 0.0  ;;  %v836_v49 = vmul.f32 %v2399_v9, %v771_v60 }
 0x15d   :  { %v867_v37 = vsel %vm802_vm6, %v770_v61, %v835_v43  ;;  %v868_v18 = vsel %vm803_vm7, %v771_v60, %v836_v49  ;;  %v97_v60 = vld [vmem:[%s3082_s5 + $0x10] sm:$0xff] }
 0x15e   :  { %v895_v62 = vpack.c.bf16 %v869_v17, %v867_v37  ;;  %v896_v56 = vpack.c.bf16 %v870_v57, %v868_v18  ;;  %v107_v18 = vld [vmem:[%s3082_s5 + $0x60] sm:$0xff] }
 0x15f   :  { %v536_v27 = vpop.permute.xlu1 %535  ;;  %969 = vperm.xlu2 %1899, %v107_v18   ;;  %v148_v18 = vld [vmem:[%s3085_s8 + $0x28] sm:$0xff] }
 0x160   :  { %v600_v1 = vmul.f32 %v2340_v50, %v536_v27  ;;  %v601_v3 = vmul.f32 %v2342_v14, %v536_v27  ;;  %1040 = vmatpush.bf16.msra.mxu0 %v895_v62  ;;  %1089 = vmatpush.bf16.msra.mxu1 %v896_v56 }
 0x161   :  { %919 = vperm.xlu1 %1898, %v97_v60   ;;  %v139_v60 = vld [vmem:[%s3084_s7 + $0x60] sm:$0xff] }
 0x162   :  { %v632_v12 = vadd.f32 %v600_v1, %v498_v0  ;;  %v633_v44 = vadd.f32 %v601_v3, %v499_v42  ;;  %939 = vperm.xlu0 %1897, %v101_v7  }
 0x164   :  { %v766_v29 = vadd.f32 %v734_v39, %v632_v12  ;;  %v767_v2 = vadd.f32 %v735_v5, %v633_v44  ;;  %v666_v35 = vpop.permute.xlu2 %665  ;;  %v1824_v12 = vld [vmem:[%s3081_s4] sm:$0xff]  ;;  %v105_v44 = vld [vmem:[%s3082_s5 + $0x50] sm:$0xff] }
 0x165   :  { %v732_v49 = vmul.f32 %v2348_v26, %v666_v35  ;;  %v733_v30 = vmul.f32 %v2350_v40, %v666_v35  ;;  %v149_v35 = vld [vmem:[%s3085_s8 + $0x30] sm:$0xff] }
 0x166   :  { %vm798_vm10 = vcmp.gt.f32.partialorder %v766_v29, 0.0  ;;  %v831_v34 = vmul.f32 %v2399_v9, %v766_v29  ;;  %vm799_vm11 = vcmp.gt.f32.partialorder %v767_v2, 0.0  ;;  %v832_v10 = vmul.f32 %v2399_v9, %v767_v2 }
 0x167   :  { %959 = vperm.xlu2 %1899, %v105_v44  }
 0x168   :  { %v398_v55 = vpop.permute.xlu1 %397  ;;  %v863_v52 = vsel %vm798_vm10, %v766_v29, %v831_v34  ;;  %v864_v19 = vsel %vm799_vm11, %v767_v2, %v832_v10  ;;  %v104_v29 = vld [vmem:[%s3082_s5 + $0x48] sm:$0xff]  ;;  %v99_v34 = vld [vmem:[%s3082_s5 + $0x20] sm:$0xff] }
 0x169   :  { %v893_v48 = vpack.c.bf16 %v865_v53, %v863_v52  ;;  %v894_v46 = vpack.c.bf16 %v866_v8, %v864_v19  ;;  %v464_v21 = vmul.f32 %v2330_v36, %v398_v55  ;;  %v465_v25 = vmul.f32 %v2332_v45, %v398_v55  ;;  %v3115_v36 = vld [vmem:[#allocation11_spill] sm:$0xff]  ;;  %v3116_v45 = vld [vmem:[#allocation12_spill] sm:$0xff]  ;;  %914 = vperm.xlu1 %1898, %v96_v28   ;;  %v132_v2 = vld [vmem:[%s3084_s7 + $0x28] sm:$0xff] }
 0x16a   :  { %934 = vperm.xlu0 %1897, %v100_v54   ;;  %v494_v57 = vadd.f32 %v462_v16, %v3115_v36  ;;  %v495_v13 = vadd.f32 %v463_v6, %v3116_v45  ;;  %v135_v10 = vld [vmem:[%s3084_s7 + $0x40] sm:$0xff]  ;;  %v98_v55 = vld [vmem:[%s3082_s5 + $0x18] sm:$0xff]  ;;  %v1826_v19 = vld [vmem:[%s3081_s4 + $0x10] sm:$0xff] }
 0x16b   :  { %1041 = vmatpush.bf16.msra.mxu0 %v893_v48  ;;  %1090 = vmatpush.bf16.msra.mxu1 %v894_v46  ;;  %v496_v41 = vadd.f32 %v464_v21, %v3113_v20  ;;  %v497_v59 = vadd.f32 %v465_v25, %v3114_v33  ;;  %v138_v52 = vld [vmem:[%s3084_s7 + $0x58] sm:$0xff]  ;;  %v127_v8 = vld [vmem:[%s3084_s7] sm:$0xff]  ;;  %v141_v48 = vld [vmem:[%s3084_s7 + $0x70] sm:$0xff] }
 0x16c   :  { %v134_v53 = vld [vmem:[%s3084_s7 + $0x38] sm:$0xff]  ;;  %v137_v46 = vld [vmem:[%s3084_s7 + $0x50] sm:$0xff]  ;;  %v144_v54 = vld [vmem:[%s3085_s8 + $0x8] sm:$0xff] }
 0x16d   :  { %v630_v24 = vadd.f32 %v598_v4, %v496_v41  ;;  %v631_v43 = vadd.f32 %v599_v23, %v497_v59  ;;  %v140_v21 = vld [vmem:[%s3084_s7 + $0x68] sm:$0xff]  ;;  %v1827_v25 = vld [vmem:[%s3081_s4 + $0x18] sm:$0xff]  ;;  %v133_v4 = vld [vmem:[%s3084_s7 + $0x30] sm:$0xff] }
 0x16e   :  { %v147_v23 = vld [vmem:[%s3085_s8 + $0x20] sm:$0xff]  ;;  %v136_v41 = vld [vmem:[%s3084_s7 + $0x48] sm:$0xff]  ;;  %v150_v33 = vld [vmem:[%s3085_s8 + $0x38] sm:$0xff] }
 0x16f   :  { %v764_v58 = vadd.f32 %v732_v49, %v630_v24  ;;  %v765_v0 = vadd.f32 %v733_v30, %v631_v43  ;;  %954 = vperm.xlu2 %1899, %v104_v29   ;;  %v143_v20 = vld [vmem:[%s3085_s8] sm:$0xff]  ;;  %v146_v59 = vld [vmem:[%s3085_s8 + $0x18] sm:$0xff]  ;;  %v156_v6 = vld [vmem:[%s3085_s8 + $0x68] sm:$0xff] }
 0x170   :  { %v142_v16 = vld [vmem:[%s3084_s7 + $0x78] sm:$0xff]  ;;  %v152_v24 = vld [vmem:[%s3085_s8 + $0x48] sm:$0xff]  ;;  %v145_v49 = vld [vmem:[%s3085_s8 + $0x10] sm:$0xff] }
 0x171   :  { %v528_v61 = vpop.permute.xlu1 %527  ;;  %v829_v22 = vmul.f32 %v2399_v9, %v764_v58  ;;  %v830_v39 = vmul.f32 %v2399_v9, %v765_v0  ;;  %vm796_vm12 = vcmp.gt.f32.partialorder %v764_v58, 0.0  ;;  %vm797_vm13 = vcmp.gt.f32.partialorder %v765_v0, 0.0  ;;  %v1829_v43 = vld [vmem:[%s3081_s4 + $0x28] sm:$0xff]  ;;  %v159_v30 = vld [vmem:[#allocation4] sm:$0x1]  ;;  %v1830_v45 = vld [vmem:[%s3081_s4 + $0x30] sm:$0xff] }
 0x172   :  { %909 = vperm.xlu0 %1897, %v95_v38   ;;  %v596_v37 = vmul.f32 %v2340_v50, %v528_v61  ;;  %v597_v17 = vmul.f32 %v2342_v14, %v528_v61  ;;  %v1828_v61 = vld [vmem:[%s3081_s4 + $0x20] sm:$0xff]  ;;  %v153_v38 = vld [vmem:[%s3085_s8 + $0x50] sm:$0xff] }
 0x173   :  { %v861_v3 = vsel %vm796_vm12, %v764_v58, %v829_v22  ;;  %v862_v63 = vsel %vm797_vm13, %v765_v0, %v830_v39  ;;  %v151_v58 = vld [vmem:[%s3085_s8 + $0x40] sm:$0xff] }
 0x174   :  { %v628_v56 = vadd.f32 %v596_v37, %v494_v57  ;;  %v629_v50 = vadd.f32 %v597_v17, %v495_v13  ;;  %v155_v37 = vld [vmem:[%s3085_s8 + $0x60] sm:$0xff]  ;;  %v158_v13 = vld [vmem:[%s3085_s8 + $0x78] sm:$0xff] }
 0x177   :  { %929 = vperm.xlu2 %1899, %v99_v34  }
 0x17a   :  { %v662_v62 = vpop.permute.xlu1 %661  ;;  %1253 = vperm.xlu0 %1897, %v128_v11  }
 0x17b   :  { %v730_v14 = vmul.f32 %v2348_v26, %v662_v62  ;;  %v731_v31 = vmul.f32 %v2350_v40, %v662_v62  ;;  %v154_v62 = vld [vmem:[%s3085_s8 + $0x58] sm:$0xff] }
 0x17d   :  { %v762_v42 = vadd.f32 %v730_v14, %v628_v56  ;;  %v763_v15 = vadd.f32 %v731_v31, %v629_v50  ;;  %v1831_v14 = vld [vmem:[%s3081_s4 + $0x38] sm:$0xff] }
 0x17f   :  { %vm794_vm14 = vcmp.gt.f32.partialorder %v762_v42, 0.0  ;;  %v827_v27 = vmul.f32 %v2399_v9, %v762_v42  ;;  %vm795_vm15 = vcmp.gt.f32.partialorder %v763_v15, 0.0  ;;  %v828_v5 = vmul.f32 %v2399_v9, %v763_v15  ;;  %v129_v9 = vld [vmem:[%s3084_s7 + $0x10] sm:$0xff]  ;;  %924 = vperm.xlu2 %1899, %v98_v55  }
 0x180   :  { %1258 = vperm.xlu1 %1898, %v129_v9  }
 0x181   :  { %v859_v1 = vsel %vm794_vm14, %v762_v42, %v827_v27  ;;  %v860_v26 = vsel %vm795_vm15, %v763_v15, %v828_v5  ;;  %v157_v42 = vld [vmem:[%s3085_s8 + $0x70] sm:$0xff] }
 0x182   :  { %v891_v40 = vpack.c.bf16 %v861_v3, %v859_v1  ;;  %v892_v7 = vpack.c.bf16 %v862_v63, %v860_v26  ;;  %1268 = vperm.xlu0 %1897, %v131_v51  }
 0x184   :  { %1042 = vmatpush.bf16.msra.mxu0 %v891_v40  ;;  %1091 = vmatpush.bf16.msra.mxu1 %v892_v7  ;;  %v2823_v40 = vstv %s1758_s23 }
 0x187   :  { %1043 = vmatmul.bf16.vlgmr.msra.gmra.mxu0 %v1824_v12  ;;  %1092 = vmatmul.bf16.vlgmr.msra.gmra.mxu1 %v1824_v12 }
 0x188   :  { %1273 = vperm.xlu1 %1898, %v132_v2   ;;  %1248 = vperm.xlu2 %1899, %v127_v8  }
 0x18a   :  { %1283 = vperm.xlu0 %1897, %v134_v53  }
 0x190   :  { %1288 = vperm.xlu1 %1898, %v135_v10   ;;  %1263 = vperm.xlu2 %1899, %v130_v47  }
 0x192   :  { %1298 = vperm.xlu0 %1897, %v137_v46  }
 0x197   :  { %1048 = vmatmul.bf16.gmra.mxu0 %v1825_v32  ;;  %1097 = vmatmul.bf16.gmra.mxu1 %v1825_v32 }
 0x198   :  { %1303 = vperm.xlu1 %1898, %v138_v52   ;;  %1278 = vperm.xlu2 %1899, %v133_v4  }
 0x19a   :  { %1313 = vperm.xlu0 %1897, %v140_v21  }
 0x1a0   :  { %1318 = vperm.xlu1 %1898, %v141_v48   ;;  %1293 = vperm.xlu2 %1899, %v136_v41  }
 0x1a2   :  { %1571 = vperm.xlu0 %1897, %v143_v20  }
 0x1a7   :  { %1053 = vmatmul.bf16.gmra.mxu0 %v1826_v19  ;;  %1102 = vmatmul.bf16.gmra.mxu1 %v1826_v19 }
 0x1a8   :  { %1576 = vperm.xlu1 %1898, %v144_v54   ;;  %1308 = vperm.xlu2 %1899, %v139_v60  }
 0x1aa   :  { %1586 = vperm.xlu0 %1897, %v146_v59  }
 0x1b0   :  { %1591 = vperm.xlu1 %1898, %v147_v23   ;;  %1323 = vperm.xlu2 %1899, %v142_v16  }
 0x1b1   :  { %v2780_v17 = vpop.permute.xlu1 %984 }
 0x1b2   :  { %1601 = vperm.xlu0 %1897, %v149_v35  }
 0x1b4   :  { %v2785_v36 = vpop.permute.xlu0 %979 }
 0x1b7   :  { %1058 = vmatmul.bf16.gmra.mxu0 %v1827_v25  ;;  %1107 = vmatmul.bf16.gmra.mxu1 %v1827_v25 }
 0x1b8   :  { %1606 = vperm.xlu1 %1898, %v150_v33   ;;  %1581 = vperm.xlu2 %1899, %v145_v49  }
 0x1b9   :  { %v2807_v50 = vpop.permute.xlu2 %969 }
 0x1ba   :  { %1616 = vperm.xlu0 %1897, %v152_v24   ;;  %v2787_v57 = vpop.permute.xlu1 %974 }
 0x1c0   :  { %1621 = vperm.xlu1 %1898, %v153_v38   ;;  %1596 = vperm.xlu2 %1899, %v148_v18  }
 0x1c1   :  { %v2819_v22 = vpop.permute.xlu2 %959 }
 0x1c2   :  { %1631 = vperm.xlu0 %1897, %v155_v37  }
 0x1c3   :  { %v2800_v28 = vpop.permute.xlu1 %949 }
 0x1c7   :  { %1063 = vmatmul.bf16.gmra.mxu0 %v1828_v61  ;;  %1112 = vmatmul.bf16.gmra.mxu1 %v1828_v61 }
 0x1c8   :  { %1636 = vperm.xlu1 %1898, %v156_v6   ;;  %1611 = vperm.xlu2 %1899, %v151_v58  }
 0x1c9   :  { %v2821_v3 = vpop.permute.xlu2 %954 }
 0x1ca   :  { %1646 = vperm.xlu0 %1897, %v158_v13  }
 0x1cb   :  { %v2812_v31 = vpop.permute.xlu1 %944 }
 0x1cc   :  { %v2798_v0 = vpop.permute.xlu0 %964 }
 0x1d0   :  { %1725 = vperm.xlu1 %1898, %v159_v30   ;;  %1626 = vperm.xlu2 %1899, %v154_v62  }
 0x1d1   :  { %v930_v10 = vpop.permute.xlu2 %929 }
 0x1d3   :  { %v920_v39 = vpop.permute.xlu1 %919 }
 0x1d4   :  { %v2805_v56 = vpop.permute.xlu0 %939 }
 0x1d7   :  { %1068 = vmatmul.bf16.gmra.mxu0 %v1829_v43  ;;  %1117 = vmatmul.bf16.gmra.mxu1 %v1829_v43 }
 0x1d8   :  { %1641 = vperm.xlu2 %1899, %v157_v42  }
 0x1d9   :  { %v925_v21 = vpop.permute.xlu2 %924 }
 0x1db   :  { %v915_v7 = vpop.permute.xlu1 %914 }
 0x1dc   :  { %v2817_v15 = vpop.permute.xlu0 %934 }
 0x1e4   :  { %v910_v1 = vpop.permute.xlu0 %909 }
 0x1e7   :  { %1073 = vmatmul.bf16.gmra.mxu0 %v1830_v45  ;;  %1122 = vmatmul.bf16.gmra.mxu1 %v1830_v45 }
 0x1f7   :  { %1078 = vmatmul.bf16.gmra.mxu0 %v1831_v14  ;;  %1127 = vmatmul.bf16.gmra.mxu1 %v1831_v14 }
 0x204   :  { %v1044_v27 = vpop.f32.mrf.mxu0  ;;  %v1093_v5 = vpop.f32.mrf.mxu1 }
 0x205   :  { %v1045_v26 = vadd.f32 %v1044_v27, %v910_v1  ;;  %v1094_v63 = vadd.f32 %v1093_v5, %v910_v1 }
 0x207   :  { %v1166_v9 = vmul.f32 %v2823_v40, %v1045_v26  ;;  %v1167_v11 = vmul.f32 %v2823_v40, %v1094_v63  ;;  %vm1133_vm0 = vcmp.gt.f32.partialorder %v1045_v26, 0.0  ;;  %vm1134_vm1 = vcmp.gt.f32.partialorder %v1094_v63, 0.0 }
 0x209   :  { %v2829_v51 = vsel %vm1133_vm0, %v1045_v26, %v1166_v9  ;;  %v2833_v52 = vsel %vm1134_vm1, %v1094_v63, %v1167_v11 }
 0x20c   :  { %v1046_v12 = vpop.f32.mrf.mxu0  ;;  %v1095_v44 = vpop.f32.mrf.mxu1 }
 0x20d   :  { %v1047_v29 = vadd.f32 %v1046_v12, %v915_v7  ;;  %v1096_v2 = vadd.f32 %v1095_v44, %v915_v7 }
 0x20f   :  { %v1168_v32 = vmul.f32 %v2823_v40, %v1047_v29  ;;  %v1169_v34 = vmul.f32 %v2823_v40, %v1096_v2  ;;  %vm1135_vm2 = vcmp.gt.f32.partialorder %v1047_v29, 0.0  ;;  %vm1136_vm3 = vcmp.gt.f32.partialorder %v1096_v2, 0.0 }
 0x211   :  { %v2831_v55 = vsel %vm1135_vm2, %v1047_v29, %v1168_v32  ;;  %v2835_v53 = vsel %vm1136_vm3, %v1096_v2, %v1169_v34 }
 0x212   :  { %v1230_v19 = vpack.c.bf16 %v2831_v55, %v2829_v51  ;;  %v1231_v8 = vpack.c.bf16 %v2835_v53, %v2833_v52  ;;  %v1835_v51 = vld [vmem:[%s3083_s6 + $0x18] sm:$0xff]  ;;  %v1836_v55 = vld [vmem:[%s3083_s6 + $0x20] sm:$0xff]  ;;  %v1837_v52 = vld [vmem:[%s3083_s6 + $0x28] sm:$0xff]  ;;  %v1249_v53 = vpop.permute.xlu2 %1248 }
 0x214   :  { %v1049_v48 = vpop.f32.mrf.mxu0  ;;  %v1098_v46 = vpop.f32.mrf.mxu1 }
 0x215   :  { %v1050_v47 = vadd.f32 %v1049_v48, %v920_v39  ;;  %v1099_v54 = vadd.f32 %v1098_v46, %v920_v39 }
 0x217   :  { %v1170_v23 = vmul.f32 %v2823_v40, %v1050_v47  ;;  %v1171_v20 = vmul.f32 %v2823_v40, %v1099_v54  ;;  %vm1137_vm4 = vcmp.gt.f32.partialorder %v1050_v47, 0.0  ;;  %vm1138_vm5 = vcmp.gt.f32.partialorder %v1099_v54, 0.0 }
 0x219   :  { %v2845_v60 = vsel %vm1137_vm4, %v1050_v47, %v1170_v23  ;;  %v2849_v35 = vsel %vm1138_vm5, %v1099_v54, %v1171_v20 }
 0x21c   :  { %v1051_v25 = vpop.f32.mrf.mxu0  ;;  %v1100_v4 = vpop.f32.mrf.mxu1 }
 0x21d   :  { %v1052_v41 = vadd.f32 %v1051_v25, %v925_v21  ;;  %v1101_v33 = vadd.f32 %v1100_v4, %v925_v21 }
 0x21f   :  { %v1172_v59 = vmul.f32 %v2823_v40, %v1052_v41  ;;  %v1173_v61 = vmul.f32 %v2823_v40, %v1101_v33  ;;  %vm1139_vm6 = vcmp.gt.f32.partialorder %v1052_v41, 0.0  ;;  %vm1140_vm7 = vcmp.gt.f32.partialorder %v1101_v33, 0.0 }
 0x221   :  { %v2847_v38 = vsel %vm1139_vm6, %v1052_v41, %v1172_v59  ;;  %v2851_v16 = vsel %vm1140_vm7, %v1101_v33, %v1173_v61 }
 0x222   :  { %v1232_v6 = vpack.c.bf16 %v2847_v38, %v2845_v60  ;;  %v1233_v24 = vpack.c.bf16 %v2851_v16, %v2849_v35  ;;  %v1833_v60 = vld [vmem:[%s3083_s6 + $0x8] sm:$0xff]  ;;  %v1834_v38 = vld [vmem:[%s3083_s6 + $0x10] sm:$0xff]  ;;  %v1254_v35 = vpop.permute.xlu0 %1253  ;;  %v2982_v16 = vpop.permute.xlu2 %1263 }
 0x224   :  { %v1054_v43 = vpop.f32.mrf.mxu0  ;;  %v1103_v49 = vpop.f32.mrf.mxu1 }
 0x225   :  { %v1055_v30 = vadd.f32 %v1054_v43, %v930_v10  ;;  %v1104_v37 = vadd.f32 %v1103_v49, %v930_v10 }
 0x227   :  { %v1174_v13 = vmul.f32 %v2823_v40, %v1055_v30  ;;  %v1175_v58 = vmul.f32 %v2823_v40, %v1104_v37  ;;  %vm1141_vm8 = vcmp.gt.f32.partialorder %v1055_v30, 0.0  ;;  %vm1142_vm9 = vcmp.gt.f32.partialorder %v1104_v37, 0.0 }
 0x229   :  { %v2863_v27 = vsel %vm1141_vm8, %v1055_v30, %v1174_v13  ;;  %v2867_v1 = vsel %vm1142_vm9, %v1104_v37, %v1175_v58 }
 0x22c   :  { %v1056_v18 = vpop.f32.mrf.mxu0  ;;  %v1105_v45 = vpop.f32.mrf.mxu1 }
 0x22d   :  { %v1057_v62 = vadd.f32 %v1056_v18, %v2817_v15  ;;  %v1106_v14 = vadd.f32 %v1105_v45, %v2817_v15 }
 0x22f   :  { %v1176_v42 = vmul.f32 %v2823_v40, %v1057_v62  ;;  %v1177_v39 = vmul.f32 %v2823_v40, %v1106_v14  ;;  %vm1143_vm10 = vcmp.gt.f32.partialorder %v1057_v62, 0.0  ;;  %vm1144_vm11 = vcmp.gt.f32.partialorder %v1106_v14, 0.0 }
 0x231   :  { %v2865_v5 = vsel %vm1143_vm10, %v1057_v62, %v1176_v42  ;;  %v2869_v26 = vsel %vm1144_vm11, %v1106_v14, %v1177_v39 }
 0x232   :  { %v1234_v63 = vpack.c.bf16 %v2865_v5, %v2863_v27  ;;  %v1235_v15 = vpack.c.bf16 %v2869_v26, %v2867_v1  ;;  %v1839_v27 = vld [vmem:[%s3083_s6 + $0x38] sm:$0xff]  ;;  %v2991_v5 = vpop.permute.xlu2 %1278 }
 0x234   :  { %v1059_v7 = vpop.f32.mrf.mxu0  ;;  %v1108_v12 = vpop.f32.mrf.mxu1 }
 0x235   :  { %v1060_v44 = vadd.f32 %v1059_v7, %v2805_v56  ;;  %v1109_v9 = vadd.f32 %v1108_v12, %v2805_v56 }
 0x237   :  { %v1178_v2 = vmul.f32 %v2823_v40, %v1060_v44  ;;  %v1179_v32 = vmul.f32 %v2823_v40, %v1109_v9  ;;  %vm1145_vm12 = vcmp.gt.f32.partialorder %v1060_v44, 0.0  ;;  %vm1146_vm13 = vcmp.gt.f32.partialorder %v1109_v9, 0.0 }
 0x239   :  { %v2883_v47 = vsel %vm1145_vm12, %v1060_v44, %v1178_v2  ;;  %v2887_v54 = vsel %vm1146_vm13, %v1109_v9, %v1179_v32 }
 0x23c   :  { %v1061_v11 = vpop.f32.mrf.mxu0  ;;  %v1110_v29 = vpop.f32.mrf.mxu1 }
 0x23d   :  { %v1062_v34 = vadd.f32 %v1061_v11, %v2812_v31  ;;  %v1111_v10 = vadd.f32 %v1110_v29, %v2812_v31 }
 0x23f   :  { %v1180_v48 = vmul.f32 %v2823_v40, %v1062_v34  ;;  %v1181_v46 = vmul.f32 %v2823_v40, %v1111_v10  ;;  %vm1147_vm14 = vcmp.gt.f32.partialorder %v1062_v34, 0.0  ;;  %vm1148_vm15 = vcmp.gt.f32.partialorder %v1111_v10, 0.0 }
 0x241   :  { %v2885_v56 = vsel %vm1147_vm14, %v1062_v34, %v1180_v48  ;;  %v2889_v21 = vsel %vm1148_vm15, %v1111_v10, %v1181_v46 }
 0x242   :  { %v1236_v25 = vpack.c.bf16 %v2885_v56, %v2883_v47  ;;  %v1237_v31 = vpack.c.bf16 %v2889_v21, %v2887_v54 }
 0x244   :  { %v1064_v4 = vpop.f32.mrf.mxu0  ;;  %v1113_v23 = vpop.f32.mrf.mxu1 }
 0x24c   :  { %v1066_v20 = vpop.f32.mrf.mxu0  ;;  %v1115_v41 = vpop.f32.mrf.mxu1 }
 0x24d   :  { %v2900_v39 = vadd.f32 %v1066_v20, %v2821_v3  ;;  %v2903_v7 = vadd.f32 %v1115_v41, %v2821_v3 }
 0x24f   :  { %vm1151_vm12 = vcmp.gt.f32.partialorder %v2900_v39, 0.0  ;;  %vm1152_vm13 = vcmp.gt.f32.partialorder %v2903_v7, 0.0 }
 0x254   :  { %v1069_v33 = vpop.f32.mrf.mxu0  ;;  %v1118_v59 = vpop.f32.mrf.mxu1 }
 0x255   :  { %v1070_v12 = vadd.f32 %v1069_v33, %v2819_v22  ;;  %v1119_v44 = vadd.f32 %v1118_v59, %v2819_v22 }
 0x257   :  { %vm1153_vm10 = vcmp.gt.f32.partialorder %v1070_v12, 0.0  ;;  %vm1154_vm11 = vcmp.gt.f32.partialorder %v1119_v44, 0.0 }
 0x25c   :  { %v1071_v61 = vpop.f32.mrf.mxu0  ;;  %v1120_v43 = vpop.f32.mrf.mxu1 }
 0x25d   :  { %v1072_v9 = vadd.f32 %v1071_v61, %v2798_v0  ;;  %v1121_v11 = vadd.f32 %v1120_v43, %v2798_v0 }
 0x25f   :  { %vm1155_vm8 = vcmp.gt.f32.partialorder %v1072_v9, 0.0  ;;  %vm1156_vm9 = vcmp.gt.f32.partialorder %v1121_v11, 0.0 }
 0x264   :  { %v1074_v49 = vpop.f32.mrf.mxu0  ;;  %v1123_v30 = vpop.f32.mrf.mxu1 }
 0x265   :  { %v1124_v29 = vadd.f32 %v1123_v30, %v2807_v50  ;;  %v1189_v30 = vmul.f32 %v2823_v40, %v1121_v11 }
 0x267   :  { %v1191_v20 = vmul.f32 %v2823_v40, %v1124_v29  ;;  %vm1158_vm7 = vcmp.gt.f32.partialorder %v1124_v29, 0.0 }
 0x26c   :  { %v1076_v37 = vpop.f32.mrf.mxu0  ;;  %v1125_v18 = vpop.f32.mrf.mxu1 }
 0x26d   :  { %v1077_v14 = vadd.f32 %v1076_v37, %v2787_v57  ;;  %v1126_v42 = vadd.f32 %v1125_v18, %v2787_v57 }
 0x26f   :  { %v1192_v22 = vmul.f32 %v2823_v40, %v1077_v14  ;;  %v1193_v48 = vmul.f32 %v2823_v40, %v1126_v42  ;;  %vm1159_vm4 = vcmp.gt.f32.partialorder %v1077_v14, 0.0  ;;  %vm1160_vm5 = vcmp.gt.f32.partialorder %v1126_v42, 0.0 }
 0x271   :  { %v1224_v37 = vsel %vm1159_vm4, %v1077_v14, %v1192_v22  ;;  %v1225_v18 = vsel %vm1160_vm5, %v1126_v42, %v1193_v48  ;;  %v1184_v14 = vmul.f32 %v2823_v40, %v2900_v39 }
 0x273   :  { %v1216_v48 = vsel %vm1151_vm12, %v2900_v39, %v1184_v14 }
 0x274   :  { %v1079_v45 = vpop.f32.mrf.mxu0  ;;  %v1128_v13 = vpop.f32.mrf.mxu1 }
 0x275   :  { %v1080_v58 = vadd.f32 %v1079_v45, %v2785_v36  ;;  %v1129_v62 = vadd.f32 %v1128_v13, %v2785_v36  ;;  %v1075_v36 = vadd.f32 %v1074_v49, %v2807_v50  ;;  %v1188_v49 = vmul.f32 %v2823_v40, %v1072_v9 }
 0x276   :  { %v1065_v45 = vadd.f32 %v1064_v4, %v2800_v28  ;;  %v1114_v13 = vadd.f32 %v1113_v23, %v2800_v28  ;;  %v1185_v28 = vmul.f32 %v2823_v40, %v2903_v7  ;;  %v1221_v23 = vsel %vm1156_vm9, %v1121_v11, %v1189_v30 }
 0x277   :  { %v1194_v32 = vmul.f32 %v2823_v40, %v1080_v58  ;;  %v1195_v34 = vmul.f32 %v2823_v40, %v1129_v62  ;;  %vm1161_vm0 = vcmp.gt.f32.partialorder %v1080_v58, 0.0  ;;  %vm1162_vm1 = vcmp.gt.f32.partialorder %v1129_v62, 0.0 }
 0x278   :  { %v1190_v46 = vmul.f32 %v2823_v40, %v1075_v36  ;;  %vm1157_vm6 = vcmp.gt.f32.partialorder %v1075_v36, 0.0  ;;  %v1220_v4 = vsel %vm1155_vm8, %v1072_v9, %v1188_v49  ;;  %v1182_v42 = vmul.f32 %v2823_v40, %v1065_v45 }
 0x279   :  { %v1226_v41 = vsel %vm1161_vm0, %v1080_v58, %v1194_v32  ;;  %v1227_v33 = vsel %vm1162_vm1, %v1129_v62, %v1195_v34  ;;  %v1186_v58 = vmul.f32 %v2823_v40, %v1070_v12  ;;  %v1187_v62 = vmul.f32 %v2823_v40, %v1119_v44 }
 0x27a   :  { %vm1149_vm14 = vcmp.gt.f32.partialorder %v1065_v45, 0.0  ;;  %vm1150_vm15 = vcmp.gt.f32.partialorder %v1114_v13, 0.0  ;;  %v1217_v9 = vsel %vm1152_vm13, %v2903_v7, %v1185_v28 }
 0x27b   :  { %v1214_v11 = vsel %vm1149_vm14, %v1065_v45, %v1182_v42 }
 0x27c   :  { %v1081_v2 = vpop.f32.mrf.mxu0  ;;  %v1130_v57 = vpop.f32.mrf.mxu1 }
 0x27d   :  { %v1082_v3 = vadd.f32 %v1081_v2, %v2780_v17  ;;  %v1131_v10 = vadd.f32 %v1130_v57, %v2780_v17  ;;  %v1222_v2 = vsel %vm1157_vm6, %v1075_v36, %v1190_v46  ;;  %v1223_v57 = vsel %vm1158_vm7, %v1124_v29, %v1191_v20 }
 0x27e   :  { %v1242_v32 = vpack.c.bf16 %v1224_v37, %v1222_v2  ;;  %v1243_v34 = vpack.c.bf16 %v1225_v18, %v1223_v57  ;;  %v1183_v36 = vmul.f32 %v2823_v40, %v1114_v13  ;;  %v1218_v29 = vsel %vm1153_vm10, %v1070_v12, %v1186_v58 }
 0x27f   :  { %v1196_v0 = vmul.f32 %v2823_v40, %v1082_v3  ;;  %v1197_v50 = vmul.f32 %v2823_v40, %v1131_v10  ;;  %vm1163_vm2 = vcmp.gt.f32.partialorder %v1082_v3, 0.0  ;;  %vm1164_vm3 = vcmp.gt.f32.partialorder %v1131_v10, 0.0  ;;  %v1832_v40 = vld [vmem:[%s3083_s6] sm:$0xff] }
 0x280   :  { %v3009_v12 = vstv %s1759_s15 }
 0x281   :  { %v1228_v17 = vsel %vm1163_vm2, %v1082_v3, %v1196_v0  ;;  %v1229_v59 = vsel %vm1164_vm3, %v1131_v10, %v1197_v50  ;;  %v1219_v3 = vsel %vm1154_vm11, %v1119_v44, %v1187_v62  ;;  %v1240_v10 = vpack.c.bf16 %v1220_v4, %v1218_v29 }
 0x282   :  { %v1244_v61 = vpack.c.bf16 %v1228_v17, %v1226_v41  ;;  %v1245_v43 = vpack.c.bf16 %v1229_v59, %v1227_v33  ;;  %v1241_v22 = vpack.c.bf16 %v1221_v23, %v1219_v3  ;;  %v1215_v0 = vsel %vm1150_vm15, %v1114_v13, %v1183_v36 }
 0x283   :  { %v1238_v50 = vpack.c.bf16 %v1216_v48, %v1214_v11  ;;  %v1239_v46 = vpack.c.bf16 %v1217_v9, %v1215_v0 }
 0x284   :  { %1374 = vmatpush.bf16.msra.mxu2 %v1244_v61  ;;  %1423 = vmatpush.bf16.msra.mxu3 %v1245_v43 }
 0x288   :  { %1375 = vmatpush.bf16.msra.mxu2 %v1242_v32  ;;  %1424 = vmatpush.bf16.msra.mxu3 %v1243_v34 }
 0x28c   :  { %1376 = vmatpush.bf16.msra.mxu2 %v1240_v10  ;;  %1425 = vmatpush.bf16.msra.mxu3 %v1241_v22 }
 0x290   :  { %1377 = vmatpush.bf16.msra.mxu2 %v1238_v50  ;;  %1426 = vmatpush.bf16.msra.mxu3 %v1239_v46 }
 0x294   :  { %1378 = vmatpush.bf16.msra.mxu2 %v1236_v25  ;;  %1427 = vmatpush.bf16.msra.mxu3 %v1237_v31 }
 0x298   :  { %1379 = vmatpush.bf16.msra.mxu2 %v1234_v63  ;;  %1428 = vmatpush.bf16.msra.mxu3 %v1235_v15  ;;  %v2997_v63 = vpop.permute.xlu2 %1293 }
 0x29c   :  { %1380 = vmatpush.bf16.msra.mxu2 %v1232_v6  ;;  %1429 = vmatpush.bf16.msra.mxu3 %v1233_v24  ;;  %v2986_v24 = vpop.permute.xlu0 %1268 }
 0x2a0   :  { %1381 = vmatpush.bf16.msra.mxu2 %v1230_v19  ;;  %1430 = vmatpush.bf16.msra.mxu3 %v1231_v8  ;;  %v1838_v19 = vld [vmem:[%s3083_s6 + $0x30] sm:$0xff]  ;;  %v1259_v8 = vpop.permute.xlu1 %1258  ;;  %v3003_v21 = vpop.permute.xlu2 %1308  ;;  %s1945_s6 = smov [#allocation5]  }
 0x2a1   :  { %s1747_s16 = sshll.u32 %s1945_s6, 4  ;;  %s1748_s16 = int_to_ptr.vmem [resolvable:$true] %s1747_s16 }
 0x2a3   :  { %1382 = vmatmul.bf16.vlgmr.msra.gmra.mxu2 %v1832_v40  ;;  %1431 = vmatmul.bf16.vlgmr.msra.gmra.mxu3 %v1832_v40 }
 0x2a4   :  { %v2995_v26 = vpop.permute.xlu0 %1283 }
 0x2a8   :  { %v2984_v6 = vpop.permute.xlu1 %1273  ;;  %v3013_v49 = vpop.permute.xlu2 %1323 }
 0x2ac   :  { %v3001_v47 = vpop.permute.xlu0 %1298 }
 0x2b0   :  { %v2993_v1 = vpop.permute.xlu1 %1288  ;;  %v1582_v3 = vpop.permute.xlu2 %1581 }
 0x2b3   :  { %1387 = vmatmul.bf16.gmra.mxu2 %v1833_v60  ;;  %1436 = vmatmul.bf16.gmra.mxu3 %v1833_v60 }
 0x2b4   :  { %v3007_v7 = vpop.permute.xlu0 %1313 }
 0x2b8   :  { %v2999_v15 = vpop.permute.xlu1 %1303 }
 0x2bc   :  { %v1572_v45 = vpop.permute.xlu0 %1571 }
 0x2c0   :  { %v3005_v39 = vpop.permute.xlu1 %1318 }
 0x2c3   :  { %1392 = vmatmul.bf16.gmra.mxu2 %v1834_v38  ;;  %1441 = vmatmul.bf16.gmra.mxu3 %v1834_v38 }
 0x2c8   :  { %v1577_v18 = vpop.permute.xlu1 %1576 }
 0x2d3   :  { %1397 = vmatmul.bf16.gmra.mxu2 %v1835_v51  ;;  %1446 = vmatmul.bf16.gmra.mxu3 %v1835_v51 }
 0x2e3   :  { %1402 = vmatmul.bf16.gmra.mxu2 %v1836_v55  ;;  %1451 = vmatmul.bf16.gmra.mxu3 %v1836_v55  ;;  %v1587_v55 = vpop.permute.xlu0 %1586 }
 0x2f3   :  { %1407 = vmatmul.bf16.gmra.mxu2 %v1837_v52  ;;  %1456 = vmatmul.bf16.gmra.mxu3 %v1837_v52 }
 0x303   :  { %1412 = vmatmul.bf16.gmra.mxu2 %v1838_v19  ;;  %1461 = vmatmul.bf16.gmra.mxu3 %v1838_v19 }
 0x313   :  { %1417 = vmatmul.bf16.gmra.mxu2 %v1839_v27  ;;  %1466 = vmatmul.bf16.gmra.mxu3 %v1839_v27 }
 0x326   :  { %v1383_v56 = vpop.f32.mrf.mxu2  ;;  %v1432_v54 = vpop.f32.mrf.mxu3 }
 0x327   :  { %v1384_v25 = vadd.f32 %v1383_v56, %v1249_v53  ;;  %v1433_v31 = vadd.f32 %v1432_v54, %v1249_v53 }
 0x329   :  { %v1505_v44 = vmul.f32 %v3009_v12, %v1384_v25  ;;  %v1506_v20 = vmul.f32 %v3009_v12, %v1433_v31  ;;  %vm1472_vm0 = vcmp.gt.f32.partialorder %v1384_v25, 0.0  ;;  %vm1473_vm1 = vcmp.gt.f32.partialorder %v1433_v31, 0.0 }
 0x32b   :  { %v1537_v61 = vsel %vm1472_vm0, %v1384_v25, %v1505_v44  ;;  %v1538_v43 = vsel %vm1473_vm1, %v1433_v31, %v1506_v20  ;;  %v1592_v20 = vpop.permute.xlu1 %1591 }
 0x32c   :  { %v1649_v62 = vmul.f32 %v1572_v45, %v1537_v61  ;;  %v1650_v2 = vmul.f32 %v1572_v45, %v1538_v43 }
 0x32e   :  { %v1385_v41 = vpop.f32.mrf.mxu2  ;;  %v1434_v17 = vpop.f32.mrf.mxu3 }
 0x32f   :  { %v1386_v33 = vadd.f32 %v1385_v41, %v1254_v35  ;;  %v1435_v59 = vadd.f32 %v1434_v17, %v1254_v35 }
 0x331   :  { %vm1474_vm2 = vcmp.gt.f32.partialorder %v1386_v33, 0.0  ;;  %v1507_v30 = vmul.f32 %v3009_v12, %v1386_v33  ;;  %vm1475_vm3 = vcmp.gt.f32.partialorder %v1435_v59, 0.0  ;;  %v1508_v37 = vmul.f32 %v3009_v12, %v1435_v59 }
 0x333   :  { %v1539_v13 = vsel %vm1474_vm2, %v1386_v33, %v1507_v30  ;;  %v1540_v58 = vsel %vm1475_vm3, %v1435_v59, %v1508_v37 }
 0x334   :  { %v1651_v57 = vmul.f32 %v1577_v18, %v1539_v13  ;;  %v1652_v32 = vmul.f32 %v1577_v18, %v1540_v58 }
 0x336   :  { %v1681_v34 = vadd.f32 %v1651_v57, %v1649_v62  ;;  %v1702_v14 = vadd.f32 %v1652_v32, %v1650_v2  ;;  %v1388_v28 = vpop.f32.mrf.mxu2  ;;  %v1437_v4 = vpop.f32.mrf.mxu3 }
 0x337   :  { %v1389_v23 = vadd.f32 %v1388_v28, %v1259_v8  ;;  %v1438_v42 = vadd.f32 %v1437_v4, %v1259_v8 }
 0x339   :  { %vm1476_vm4 = vcmp.gt.f32.partialorder %v1389_v23, 0.0  ;;  %v1509_v36 = vmul.f32 %v3009_v12, %v1389_v23  ;;  %vm1477_vm5 = vcmp.gt.f32.partialorder %v1438_v42, 0.0  ;;  %v1510_v29 = vmul.f32 %v3009_v12, %v1438_v42 }
 0x33b   :  { %v1541_v10 = vsel %vm1476_vm4, %v1389_v23, %v1509_v36  ;;  %v1542_v22 = vsel %vm1477_vm5, %v1438_v42, %v1510_v29 }
 0x33c   :  { %v1653_v48 = vmul.f32 %v1582_v3, %v1541_v10  ;;  %v1654_v9 = vmul.f32 %v1582_v3, %v1542_v22 }
 0x33e   :  { %v1682_v11 = vadd.f32 %v1681_v34, %v1653_v48  ;;  %v1703_v0 = vadd.f32 %v1702_v14, %v1654_v9  ;;  %v1390_v50 = vpop.f32.mrf.mxu2  ;;  %v1439_v46 = vpop.f32.mrf.mxu3 }
 0x33f   :  { %v1391_v40 = vadd.f32 %v1390_v50, %v2982_v16  ;;  %v1440_v60 = vadd.f32 %v1439_v46, %v2982_v16 }
 0x341   :  { %vm1478_vm6 = vcmp.gt.f32.partialorder %v1391_v40, 0.0  ;;  %v1511_v38 = vmul.f32 %v3009_v12, %v1391_v40  ;;  %vm1479_vm7 = vcmp.gt.f32.partialorder %v1440_v60, 0.0  ;;  %v1512_v51 = vmul.f32 %v3009_v12, %v1440_v60 }
 0x343   :  { %v1543_v52 = vsel %vm1478_vm6, %v1391_v40, %v1511_v38  ;;  %v1544_v53 = vsel %vm1479_vm7, %v1440_v60, %v1512_v51 }
 0x344   :  { %v1655_v19 = vmul.f32 %v1587_v55, %v1543_v52  ;;  %v1656_v8 = vmul.f32 %v1587_v55, %v1544_v53  ;;  %v1602_v55 = vpop.permute.xlu0 %1601 }
 0x346   :  { %v1683_v35 = vadd.f32 %v1682_v11, %v1655_v19  ;;  %v1704_v27 = vadd.f32 %v1703_v0, %v1656_v8  ;;  %v1393_v56 = vpop.f32.mrf.mxu2  ;;  %v1442_v54 = vpop.f32.mrf.mxu3 }
 0x347   :  { %v1394_v25 = vadd.f32 %v1393_v56, %v2986_v24  ;;  %v1443_v31 = vadd.f32 %v1442_v54, %v2986_v24  ;;  %v1597_v0 = vpop.permute.xlu2 %1596 }
 0x349   :  { %vm1480_vm8 = vcmp.gt.f32.partialorder %v1394_v25, 0.0  ;;  %v1513_v16 = vmul.f32 %v3009_v12, %v1394_v25  ;;  %vm1481_vm9 = vcmp.gt.f32.partialorder %v1443_v31, 0.0  ;;  %v1514_v44 = vmul.f32 %v3009_v12, %v1443_v31 }
 0x34b   :  { %v1545_v41 = vsel %vm1480_vm8, %v1394_v25, %v1513_v16  ;;  %v1546_v17 = vsel %vm1481_vm9, %v1443_v31, %v1514_v44  ;;  %v1607_v44 = vpop.permute.xlu1 %1606 }
 0x34c   :  { %v1657_v33 = vmul.f32 %v1592_v20, %v1545_v41  ;;  %v1658_v59 = vmul.f32 %v1592_v20, %v1546_v17 }
 0x34e   :  { %v1684_v61 = vadd.f32 %v1683_v35, %v1657_v33  ;;  %v1705_v43 = vadd.f32 %v1704_v27, %v1658_v59  ;;  %v1395_v30 = vpop.f32.mrf.mxu2  ;;  %v1444_v37 = vpop.f32.mrf.mxu3 }
 0x34f   :  { %v1396_v14 = vadd.f32 %v1395_v30, %v2984_v6  ;;  %v1445_v28 = vadd.f32 %v1444_v37, %v2984_v6 }
 0x351   :  { %v1515_v4 = vmul.f32 %v3009_v12, %v1396_v14  ;;  %v1516_v23 = vmul.f32 %v3009_v12, %v1445_v28  ;;  %vm1482_vm10 = vcmp.gt.f32.partialorder %v1396_v14, 0.0  ;;  %vm1483_vm11 = vcmp.gt.f32.partialorder %v1445_v28, 0.0 }
 0x353   :  { %v1547_v48 = vsel %vm1482_vm10, %v1396_v14, %v1515_v4  ;;  %v1548_v9 = vsel %vm1483_vm11, %v1445_v28, %v1516_v23  ;;  %v1617_v23 = vpop.permute.xlu0 %1616 }
 0x354   :  { %v1659_v46 = vmul.f32 %v1597_v0, %v1547_v48  ;;  %v1660_v40 = vmul.f32 %v1597_v0, %v1548_v9 }
 0x356   :  { %v1398_v18 = vpop.f32.mrf.mxu2  ;;  %v1447_v45 = vpop.f32.mrf.mxu3  ;;  %v1685_v54 = vadd.f32 %v1684_v61, %v1659_v46  ;;  %v1706_v25 = vadd.f32 %v1705_v43, %v1660_v40 }
 0x357   :  { %v1399_v42 = vadd.f32 %v1398_v18, %v2991_v5  ;;  %v1448_v36 = vadd.f32 %v1447_v45, %v2991_v5 }
 0x359   :  { %v1517_v6 = vmul.f32 %v3009_v12, %v1399_v42  ;;  %v1518_v11 = vmul.f32 %v3009_v12, %v1448_v36  ;;  %vm1484_vm12 = vcmp.gt.f32.partialorder %v1399_v42, 0.0  ;;  %vm1485_vm13 = vcmp.gt.f32.partialorder %v1448_v36, 0.0 }
 0x35b   :  { %v1550_v51 = vsel %vm1485_vm13, %v1448_v36, %v1518_v11 }
 0x35c   :  { %v1662_v16 = vmul.f32 %v1602_v55, %v1550_v51 }
 0x35e   :  { %v1400_v13 = vpop.f32.mrf.mxu2  ;;  %v1449_v58 = vpop.f32.mrf.mxu3  ;;  %v1707_v18 = vadd.f32 %v1706_v25, %v1662_v16 }
 0x35f   :  { %v1401_v10 = vadd.f32 %v1400_v13, %v2995_v26  ;;  %v1450_v22 = vadd.f32 %v1449_v58, %v2995_v26  ;;  %v1549_v26 = vsel %vm1484_vm12, %v1399_v42, %v1517_v6 }
 0x360   :  { %v1661_v31 = vmul.f32 %v1602_v55, %v1549_v26 }
 0x361   :  { %v1519_v60 = vmul.f32 %v3009_v12, %v1401_v10  ;;  %v1520_v38 = vmul.f32 %v3009_v12, %v1450_v22  ;;  %vm1486_vm14 = vcmp.gt.f32.partialorder %v1401_v10, 0.0  ;;  %vm1487_vm15 = vcmp.gt.f32.partialorder %v1450_v22, 0.0 }
 0x362   :  { %v1686_v37 = vadd.f32 %v1685_v54, %v1661_v31 }
 0x363   :  { %v1551_v27 = vsel %vm1486_vm14, %v1401_v10, %v1519_v60  ;;  %v1552_v56 = vsel %vm1487_vm15, %v1450_v22, %v1520_v38 }
 0x364   :  { %v1663_v59 = vmul.f32 %v1607_v44, %v1551_v27  ;;  %v1664_v30 = vmul.f32 %v1607_v44, %v1552_v56 }
 0x366   :  { %v1403_v24 = vpop.f32.mrf.mxu2  ;;  %v1452_v62 = vpop.f32.mrf.mxu3 }
 0x367   :  { %v1404_v50 = vadd.f32 %v1403_v24, %v2993_v1  ;;  %v1453_v5 = vadd.f32 %v1452_v62, %v2993_v1  ;;  %v1687_v62 = vadd.f32 %v1686_v37, %v1663_v59 }
 0x369   :  { %v1521_v52 = vmul.f32 %v3009_v12, %v1404_v50  ;;  %v1522_v53 = vmul.f32 %v3009_v12, %v1453_v5  ;;  %vm1488_vm0 = vcmp.gt.f32.partialorder %v1404_v50, 0.0  ;;  %vm1489_vm1 = vcmp.gt.f32.partialorder %v1453_v5, 0.0 }
 0x36b   :  { %v1553_v20 = vsel %vm1488_vm0, %v1404_v50, %v1521_v52  ;;  %v1554_v41 = vsel %vm1489_vm1, %v1453_v5, %v1522_v53  ;;  %vm1734_vm0 = vcmask 1040384  }
 0x36e   :  { %v1405_v2 = vpop.f32.mrf.mxu2  ;;  %v1454_v57 = vpop.f32.mrf.mxu3 }
 0x36f   :  { %v1406_v19 = vadd.f32 %v1405_v2, %v2997_v63  ;;  %v1455_v8 = vadd.f32 %v1454_v57, %v2997_v63  ;;  %v1612_v63 = vpop.permute.xlu2 %1611  ;;  %v1708_v2 = vadd.f32 %v1707_v18, %v1664_v30 }
 0x370   :  { %v1665_v45 = vmul.f32 %v1612_v63, %v1553_v20  ;;  %v1666_v13 = vmul.f32 %v1612_v63, %v1554_v41 }
 0x371   :  { %v1523_v17 = vmul.f32 %v3009_v12, %v1406_v19  ;;  %v1524_v33 = vmul.f32 %v3009_v12, %v1455_v8  ;;  %vm1490_vm2 = vcmp.gt.f32.partialorder %v1406_v19, 0.0  ;;  %vm1491_vm3 = vcmp.gt.f32.partialorder %v1455_v8, 0.0 }
 0x372   :  { %v1688_v42 = vadd.f32 %v1687_v62, %v1665_v45  ;;  %v1709_v36 = vadd.f32 %v1708_v2, %v1666_v13 }
 0x373   :  { %v1555_v61 = vsel %vm1490_vm2, %v1406_v19, %v1523_v17  ;;  %v1556_v43 = vsel %vm1491_vm3, %v1455_v8, %v1524_v33 }
 0x374   :  { %v1667_v10 = vmul.f32 %v1617_v23, %v1555_v61  ;;  %v1668_v22 = vmul.f32 %v1617_v23, %v1556_v43 }
 0x376   :  { %v3027_v32 = vpop.f32.mrf.mxu2  ;;  %v1457_v34 = vpop.f32.mrf.mxu3  ;;  %v1689_v11 = vadd.f32 %v1688_v42, %v1667_v10  ;;  %v1710_v0 = vadd.f32 %v1709_v36, %v1668_v22 }
 0x377   :  { %v1409_v58 = vadd.f32 %v3027_v32, %v3001_v47  ;;  %v1458_v24 = vadd.f32 %v1457_v34, %v3001_v47  ;;  %v1627_v50 = vpop.permute.xlu2 %1626 }
 0x379   :  { %v1525_v48 = vmul.f32 %v3009_v12, %v1409_v58  ;;  %v1526_v9 = vmul.f32 %v3009_v12, %v1458_v24  ;;  %vm1492_vm4 = vcmp.gt.f32.partialorder %v1409_v58, 0.0  ;;  %vm1493_vm5 = vcmp.gt.f32.partialorder %v1458_v24, 0.0 }
 0x37b   :  { %v1557_v5 = vsel %vm1492_vm4, %v1409_v58, %v1525_v48  ;;  %v1558_v46 = vsel %vm1493_vm5, %v1458_v24, %v1526_v9 }
 0x37e   :  { %v1410_v29 = vpop.f32.mrf.mxu2  ;;  %v1459_v3 = vpop.f32.mrf.mxu3 }
 0x37f   :  { %v1411_v57 = vadd.f32 %v1410_v29, %v2999_v15  ;;  %v1460_v14 = vadd.f32 %v1459_v3, %v2999_v15  ;;  %v1622_v29 = vpop.permute.xlu1 %1621  ;;  %v1642_v43 = vpop.permute.xlu2 %1641 }
 0x380   :  { %v1669_v19 = vmul.f32 %v1622_v29, %v1557_v5  ;;  %v1670_v8 = vmul.f32 %v1622_v29, %v1558_v46 }
 0x381   :  { %v1527_v34 = vmul.f32 %v3009_v12, %v1411_v57  ;;  %v1528_v15 = vmul.f32 %v3009_v12, %v1460_v14  ;;  %vm1494_vm6 = vcmp.gt.f32.partialorder %v1411_v57, 0.0  ;;  %vm1495_vm7 = vcmp.gt.f32.partialorder %v1460_v14, 0.0 }
 0x382   :  { %v1690_v20 = vadd.f32 %v1689_v11, %v1669_v19  ;;  %v1711_v41 = vadd.f32 %v1710_v0, %v1670_v8 }
 0x383   :  { %v1559_v60 = vsel %vm1494_vm6, %v1411_v57, %v1527_v34  ;;  %v1560_v38 = vsel %vm1495_vm7, %v1460_v14, %v1528_v15 }
 0x384   :  { %v1671_v25 = vmul.f32 %v1627_v50, %v1559_v60  ;;  %v1672_v31 = vmul.f32 %v1627_v50, %v1560_v38 }
 0x386   :  { %v1413_v1 = vpop.f32.mrf.mxu2  ;;  %v1462_v35 = vpop.f32.mrf.mxu3  ;;  %v1691_v63 = vadd.f32 %v1690_v20, %v1671_v25  ;;  %v1712_v37 = vadd.f32 %v1711_v41, %v1672_v31 }
 0x387   :  { %v1414_v32 = vadd.f32 %v1413_v1, %v3003_v21  ;;  %v1463_v47 = vadd.f32 %v1462_v35, %v3003_v21  ;;  %v1632_v1 = vpop.permute.xlu0 %1631  ;;  %v1637_v33 = vpop.permute.xlu1 %1636 }
 0x389   :  { %v1529_v21 = vmul.f32 %v3009_v12, %v1414_v32  ;;  %v1530_v40 = vmul.f32 %v3009_v12, %v1463_v47  ;;  %vm1496_vm8 = vcmp.gt.f32.partialorder %v1414_v32, 0.0  ;;  %vm1497_vm9 = vcmp.gt.f32.partialorder %v1463_v47, 0.0 }
 0x38b   :  { %v1561_v35 = vsel %vm1496_vm8, %v1414_v32, %v1529_v21  ;;  %v1562_v27 = vsel %vm1497_vm9, %v1463_v47, %v1530_v40 }
 0x38c   :  { %v1674_v17 = vmul.f32 %v1632_v1, %v1562_v27 }
 0x38e   :  { %v1415_v28 = vpop.f32.mrf.mxu2  ;;  %v1464_v4 = vpop.f32.mrf.mxu3  ;;  %v1713_v2 = vadd.f32 %v1712_v37, %v1674_v17 }
 0x38f   :  { %v1416_v3 = vadd.f32 %v1415_v28, %v3007_v7  ;;  %v1465_v6 = vadd.f32 %v1464_v4, %v3007_v7  ;;  %v1647_v36 = vpop.permute.xlu0 %1646 }
 0x391   :  { %v1531_v55 = vmul.f32 %v3009_v12, %v1416_v3  ;;  %v1532_v52 = vmul.f32 %v3009_v12, %v1465_v6  ;;  %vm1498_vm10 = vcmp.gt.f32.partialorder %v1416_v3, 0.0  ;;  %vm1499_vm11 = vcmp.gt.f32.partialorder %v1465_v6, 0.0 }
 0x393   :  { %v1563_v16 = vsel %vm1498_vm10, %v1416_v3, %v1531_v55  ;;  %v1564_v44 = vsel %vm1499_vm11, %v1465_v6, %v1532_v52 }
 0x394   :  { %v1675_v18 = vmul.f32 %v1637_v33, %v1563_v16  ;;  %v1676_v45 = vmul.f32 %v1637_v33, %v1564_v44 }
 0x396   :  { %v1418_v26 = vpop.f32.mrf.mxu2  ;;  %v1467_v51 = vpop.f32.mrf.mxu3  ;;  %v1714_v42 = vadd.f32 %v1713_v2, %v1676_v45 }
 0x397   :  { %v1419_v7 = vadd.f32 %v1418_v26, %v3005_v39  ;;  %v1468_v53 = vadd.f32 %v1467_v51, %v3005_v39  ;;  %v1673_v39 = vmul.f32 %v1632_v1, %v1561_v35  ;;  %v1737_v26 = vlaneseq }
 0x399   :  { %v1533_v56 = vmul.f32 %v3009_v12, %v1419_v7  ;;  %v1534_v54 = vmul.f32 %v3009_v12, %v1468_v53  ;;  %vm1500_vm12 = vcmp.gt.f32.partialorder %v1419_v7, 0.0  ;;  %vm1501_vm13 = vcmp.gt.f32.partialorder %v1468_v53, 0.0 }
 0x39a   :  { %v1692_v62 = vadd.f32 %v1691_v63, %v1673_v39  ;;  %vm1739_vm1 = vcmp.lt.s32.totalorder %v1737_v26, 256 }
 0x39b   :  { %v1565_v59 = vsel %vm1500_vm12, %v1419_v7, %v1533_v56  ;;  %v1566_v30 = vsel %vm1501_vm13, %v1468_v53, %v1534_v54 }
 0x39c   :  { %v1677_v57 = vmul.f32 %v1642_v43, %v1565_v59  ;;  %v1678_v14 = vmul.f32 %v1642_v43, %v1566_v30  ;;  %v1693_v23 = vadd.f32 %v1692_v62, %v1675_v18 }
 0x39e   :  { %v1420_v13 = vpop.f32.mrf.mxu2  ;;  %v1469_v61 = vpop.f32.mrf.mxu3  ;;  %v1694_v48 = vadd.f32 %v1693_v23, %v1677_v57  ;;  %v1715_v9 = vadd.f32 %v1714_v42, %v1678_v14 }
 0x39f   :  { %v1421_v58 = vadd.f32 %v1420_v13, %v3013_v49  ;;  %v1470_v24 = vadd.f32 %v1469_v61, %v3013_v49 }
 0x3a1   :  { %vm1502_vm14 = vcmp.gt.f32.partialorder %v1421_v58, 0.0  ;;  %v1535_v28 = vmul.f32 %v3009_v12, %v1421_v58  ;;  %vm1503_vm15 = vcmp.gt.f32.partialorder %v1470_v24, 0.0  ;;  %v1536_v4 = vmul.f32 %v3009_v12, %v1470_v24  ;;  %v1726_v12 = vpop.permute.xlu1 %1725 }
 0x3a2   :  { %v1728_v40 = vperm.slane %v1726_v12, 0 }
 0x3a3   :  { %v1567_v10 = vsel %vm1502_vm14, %v1421_v58, %v1535_v28  ;;  %v1568_v22 = vsel %vm1503_vm15, %v1470_v24, %v1536_v4 }
 0x3a4   :  { %v1679_v32 = vmul.f32 %v1647_v36, %v1567_v10  ;;  %v1680_v47 = vmul.f32 %v1647_v36, %v1568_v22 }
 0x3a6   :  { %v1695_v49 = vadd.f32 %v1694_v48, %v1679_v32  ;;  %v1716_v34 = vadd.f32 %v1715_v9, %v1680_v47 }
 0x3a8   :  { %v1696_v15 = vrot.slane %v1695_v49, 4  ;;  %v1717_v29 = vrot.slane %v1716_v34, 4 }
 0x3aa   :  { %v1697_v3 = vadd.f32 %v1696_v15, %v1695_v49  ;;  %v1718_v6 = vadd.f32 %v1717_v29, %v1716_v34 }
 0x3ac   :  { %v1698_v11 = vrot.slane %v1697_v3, 2  ;;  %v1719_v0 = vrot.slane %v1718_v6, 2 }
 0x3ae   :  { %v1699_v50 = vadd.f32 %v1698_v11, %v1697_v3  ;;  %v1720_v5 = vadd.f32 %v1719_v0, %v1718_v6 }
 0x3b0   :  { %v1700_v46 = vrot.slane %v1699_v50, 1  ;;  %v1721_v21 = vrot.slane %v1720_v5, 1 }
 0x3b2   :  { %v1701_v60 = vadd.f32 %v1700_v46, %v1699_v50  ;;  %v1722_v38 = vadd.f32 %v1721_v21, %v1720_v5 }
 0x3b4   :  { %v1730_v51 = vadd.f32 %v1728_v40, %v1722_v38  ;;  %v1729_v55 = vadd.f32 %v1728_v40, %v1701_v60 }
 0x3b6   :  { %v1733_v52 = vrot.slane %v1730_v51, 7 }
 0x3b8   :  { %v1735_v7 = vsel %vm1734_vm0, %v1729_v55, %v1733_v52 }
 0x3b9   :  { %1741 = vst.msk [vmem:[#allocation5] sm:$0x3] %vm1739_vm1, %v1735_v7 }
 0x3ba   :  { %1752 = dma.vmem_to_hbm [thread:$0]  %s1748_s16, 32, %s1750_s2, [#allocation6]  }
 0x3bb   :  { %1938 = dma.done.wait [#allocation6], 32  }
 0x3bc   :  { %1939 = vsyncadd [#allocation6], 4294967264 }
 0x3bd   :  { %1757 = vsyncpa [#allocation6], 1 }

</bundles_post_ra>
